<compile_context>
chip_gen: v7x
topology: tpu7x:2x2x1
jax: 0.10.0
libtpu: 0.0.40
codegen_flags: <defaults>
</compile_context>

<pallas_src>
import functools
import math

import jax
import jax.numpy as jnp
import numpy as np
from jax.experimental import pallas as pl
from jax.experimental.pallas import tpu as pltpu


# ----------------------------------------------------------------------------
# Positional encoding (same as the PyTorch registered buffer).
# ----------------------------------------------------------------------------
def sinusoidal_pe(seq_len: int, d_model: int) -> jnp.ndarray:
    position = jnp.arange(seq_len, dtype=jnp.float32)[:, None]
    div_term = jnp.exp(
        jnp.arange(0, d_model, 2, dtype=jnp.float32) * (-math.log(10000.0) / d_model)
    )
    pe = jnp.zeros((seq_len, d_model), dtype=jnp.float32)
    pe = pe.at[:, 0::2].set(jnp.sin(position * div_term))
    pe = pe.at[:, 1::2].set(jnp.cos(position * div_term))
    return pe


# ----------------------------------------------------------------------------
# Fused kernel: LayerNorm -> projections -> scores -> relative shift ->
# softmax -> context -> output projection.  One grid step per batch element.
# ----------------------------------------------------------------------------
def _mmsa_kernel(x_ref, pre_ref, p_ref, gamma_ref, beta_ref,
                 wqk_ref, bqk_ref, wv_ref, bv_ref, u_ref, vb_ref,
                 wo_ref, bo_ref, rbits_ref, perms_ref, masks_ref, out_ref,
                 *, num_heads, seq_len, n_rollbits):
    H = num_heads
    S = seq_len
    cdt = jnp.bfloat16

    x = x_ref[0]          # (S, D) f32  -- query/key source
    pre = pre_ref[0]      # (S, D) f32  -- value source (pre_block, not normed)
    D = x.shape[-1]

    # ---- LayerNorm (f32, eps=1e-5 = torch default) --------------------------
    mean = jnp.mean(x, axis=-1, keepdims=True)
    var = jnp.mean(jnp.square(x - mean), axis=-1, keepdims=True)
    xn = (x - mean) * jax.lax.rsqrt(var + 1e-5)
    xn = xn * gamma_ref[...] + beta_ref[...]

    # ---- head-batched projections (bf16 operands, f32 accumulation) ---------
    xn_b = jnp.broadcast_to(xn.astype(cdt)[None], (2 * H, S, D))
    pre_b = jnp.broadcast_to(pre.astype(cdt)[None], (H, S, D))

    # fused q||k projection: (2H,S,D) x (2H,dh,D) -> (2H,S,dh)
    qk = jnp.einsum('hsd,hed->hse', xn_b, wqk_ref[...],
                    preferred_element_type=jnp.float32) + bqk_ref[...]
    q = qk[:H]            # (H, S, dh); 1/sqrt(d_model) already folded in
    k = qk[H:]

    v = jnp.einsum('hsd,hed->hse', pre_b, wv_ref[...],
                   preferred_element_type=jnp.float32) + bv_ref[...]

    qu = (q + u_ref[...]).astype(cdt)      # u, v biases pre-scaled in wrapper
    qv = (q + vb_ref[...]).astype(cdt)

    content = jnp.einsum('hid,hjd->hij', qu, k.astype(cdt),
                         preferred_element_type=jnp.float32)   # (H, S, S)
    pos = jnp.einsum('hid,hjd->hij', qv, p_ref[...],
                     preferred_element_type=jnp.float32)       # (H, S, S)

    # ---- Transformer-XL relative shift, entirely in VMEM --------------------
    # per-row left-roll of `pos` by (i+1) mod S, realised as a barrel shifter
    # whose 2^b single-step rolls are exact 0/1 permutation matmuls (MXU,
    # perms precomputed on the host) and whose per-row selection uses
    # precomputed bit masks.
    L = pos
    for b in range(n_rollbits):
        perm = jnp.broadcast_to(perms_ref[b][None], (H, S, S))
        rolled = jnp.einsum('hic,hcj->hij', L, perm,
                            preferred_element_type=jnp.float32)
        bit = rbits_ref[b]                         # (S, 1) f32: bit b of (i+1)%S
        L = jnp.where((bit != 0.0)[None], rolled, L)

    # U[i, :] = L[i+1, :]  (row shift by one; last row masked out below)
    rshift = jnp.broadcast_to(perms_ref[n_rollbits][None], (H, S, S))
    U = jnp.einsum('hir,hrj->hij', rshift, L,
                   preferred_element_type=jnp.float32)

    # masks_ref[0][i,j] = [j <= i], masks_ref[1][i,j] = [j >= i+2]
    shifted = L * masks_ref[0][None] + U * masks_ref[1][None]

    # ---- softmax (f32 statistics) --------------------------------------------
    scores = content + shifted                     # already scaled by 1/sqrt(D)
    m = jnp.max(scores, axis=-1, keepdims=True)
    e = jnp.exp(scores - m)
    denom = jnp.sum(e, axis=-1, keepdims=True)
    probs = e * pl.reciprocal(denom, approx=True)

    # ---- context + lane-dense output projection ------------------------------
    ctx = jnp.einsum('hij,hjd->hid', probs.astype(cdt), v.astype(cdt),
                     preferred_element_type=jnp.float32)       # (H, S, dh)
    outh = jnp.einsum('hid,hde->hie', ctx.astype(cdt), wo_ref[...],
                      preferred_element_type=jnp.float32)      # (H, S, D)
    out_ref[0] = jnp.sum(outh, axis=0) + bo_ref[...]


# ----------------------------------------------------------------------------
# Wrapper: parameter re-layout (outside the grid) + single pallas_call.
# ----------------------------------------------------------------------------
def mmsa_forward(inputs, pre_block, params, num_heads):
    B, S, D = inputs.shape
    assert D % num_heads == 0
    H = num_heads
    dh = D // H
    inv = 1.0 / math.sqrt(D)
    f32, bf16 = jnp.float32, jnp.bfloat16

    # batch-invariant positional projection, hoisted out of the grid
    pos_emb = sinusoidal_pe(S, D)
    p_heads = (pos_emb @ params["wp"]).reshape(S, H, dh).transpose(1, 0, 2)
    p_heads = p_heads.astype(bf16)                       # (H, S, dh)

    def per_head_T(w):                                   # (D, D) -> (H, dh, D)
        return jnp.transpose(w.reshape(D, H, dh), (1, 2, 0))

    # fused Wq||Wk, with the 1/sqrt(d_model) scale folded into the q half
    wqk = jnp.concatenate([per_head_T(params["wq"]) * inv,
                           per_head_T(params["wk"])], axis=0).astype(bf16)
    bqk = jnp.concatenate([params["bq"].reshape(H, 1, dh) * inv,
                           params["bk"].reshape(H, 1, dh)], axis=0).astype(f32)
    wv = per_head_T(params["wv"]).astype(bf16)           # (H, dh, D)
    bv = params["bv"].reshape(H, 1, dh).astype(f32)
    u_s = (params["u_bias"] * inv).reshape(H, 1, dh).astype(f32)
    v_s = (params["v_bias"] * inv).reshape(H, 1, dh).astype(f32)
    wo = params["wo"].reshape(H, dh, D).astype(bf16)     # (H, dh, D)
    bo = params["bo"].astype(f32)
    gamma = params["gamma"].astype(f32)
    beta = params["beta"].astype(f32)

    # ---- host-precomputed relative-shift helpers (loop-invariant) ----------
    n_rollbits = max((S - 1).bit_length(), 1)
    amt = (np.arange(S) + 1) % S
    rbits = np.stack([((amt >> b) & 1).astype(np.float32)
                      for b in range(n_rollbits)]).reshape(n_rollbits, S, 1)
    rbits = jnp.asarray(rbits)

    # permutation matrices: perms[b][c, j] = 1 iff (j - c) mod S == 2^b
    # (L @ perms[b] rolls columns right by 2^b), plus the row-shift matrix
    # perms[-1][i, r] = 1 iff r == i + 1.
    cc = np.arange(S)[:, None]
    jj = np.arange(S)[None, :]
    perm_list = [(((jj - cc) % S) == ((1 << b) % S)).astype(np.float32)
                 for b in range(n_rollbits)]
    rshift = (jj == cc + 1).astype(np.float32)
    perms = jnp.asarray(np.stack(perm_list + [rshift]))  # (n_rollbits+1, S, S)

    # triangular selection masks: keep-L (j <= i) and keep-U (j >= i+2)
    mlow = (jj <= cc).astype(np.float32)
    mup = (jj >= cc + 2).astype(np.float32)
    masks = jnp.asarray(np.stack([mlow, mup]))           # (2, S, S)

    kernel = functools.partial(_mmsa_kernel, num_heads=H, seq_len=S,
                               n_rollbits=n_rollbits)

    out = pl.pallas_call(
        kernel,
        out_shape=jax.ShapeDtypeStruct((B, S, D), jnp.float32),
        grid_spec=pltpu.PrefetchScalarGridSpec(
            num_scalar_prefetch=0,
            grid=(B,),
            in_specs=[
                pl.BlockSpec((1, S, D), lambda b: (b, 0, 0)),        # inputs
                pl.BlockSpec((1, S, D), lambda b: (b, 0, 0)),        # pre_block
                pl.BlockSpec((H, S, dh), lambda b: (0, 0, 0)),       # pos proj
                pl.BlockSpec((1, D), lambda b: (0, 0)),              # ln gamma
                pl.BlockSpec((1, D), lambda b: (0, 0)),              # ln beta
                pl.BlockSpec((2 * H, dh, D), lambda b: (0, 0, 0)),   # Wq||Wk
                pl.BlockSpec((2 * H, 1, dh), lambda b: (0, 0, 0)),   # bq||bk
                pl.BlockSpec((H, dh, D), lambda b: (0, 0, 0)),       # Wv
                pl.BlockSpec((H, 1, dh), lambda b: (0, 0, 0)),       # bv
                pl.BlockSpec((H, 1, dh), lambda b: (0, 0, 0)),       # u bias
                pl.BlockSpec((H, 1, dh), lambda b: (0, 0, 0)),       # v bias
                pl.BlockSpec((H, dh, D), lambda b: (0, 0, 0)),       # Wo
                pl.BlockSpec((1, D), lambda b: (0, 0)),              # bo
                pl.BlockSpec((n_rollbits, S, 1), lambda b: (0, 0, 0)),      # bits
                pl.BlockSpec((n_rollbits + 1, S, S), lambda b: (0, 0, 0)),  # perms
                pl.BlockSpec((2, S, S), lambda b: (0, 0, 0)),               # masks
            ],
            out_specs=pl.BlockSpec((1, S, D), lambda b: (b, 0, 0)),
        ),
        compiler_params=pltpu.CompilerParams(
            dimension_semantics=("parallel",),          # shard batch over TCs
            vmem_limit_bytes=48 * 1024 * 1024),
    )(inputs, pre_block, p_heads, gamma, beta,
      wqk, bqk, wv, bv, u_s, v_s, wo, bo, rbits, perms, masks)

    return out  # Dropout(p) is identity in eval mode.


# ----------------------------------------------------------------------------
# Pure-JAX reference (mirrors the PyTorch module) for verification.
# ----------------------------------------------------------------------------
def mmsa_reference(inputs, pre_block, params, num_heads):
    B, S, D = inputs.shape
    dh = D // num_heads
    pos = jnp.broadcast_to(sinusoidal_pe(S, D), (B, S, D))

    mean = jnp.mean(inputs, -1, keepdims=True)
    var = jnp.mean((inputs - mean) ** 2, -1, keepdims=True)
    xn = (inputs - mean) / jnp.sqrt(var + 1e-5) * params["gamma"] + params["beta"]

    q = xn @ params["wq"] + params["bq"]
    k = xn @ params["wk"] + params["bk"]
    v = pre_block @ params["wv"] + params["bv"]
    p = pos @ params["wp"]

    qh = q.reshape(B, S, num_heads, dh)
    kh = k.reshape(B, S, num_heads, dh).transpose(0, 2, 1, 3)
    vh = v.reshape(B, S, num_heads, dh).transpose(0, 2, 1, 3)
    ph = p.reshape(B, S, num_heads, dh)

    content = jnp.einsum("bihd,bhjd->bhij", qh + params["u_bias"], kh)
    pos_score = jnp.einsum("bihd,bjhd->bhij", qh + params["v_bias"], ph)

    zeros = jnp.zeros((B, num_heads, S, 1), jnp.float32)
    padded = jnp.concatenate([zeros, pos_score], -1).reshape(B, num_heads, S + 1, S)
    pos_score = padded[:, :, 1:, :].reshape(B, num_heads, S, S)

    score = (content + pos_score) / math.sqrt(D)
    attn = jax.nn.softmax(score, -1)
    ctx = jnp.einsum("bhij,bhjd->bihd", attn, vh).reshape(B, S, D)
    return ctx @ params["wo"] + params["bo"]


# ----------------------------------------------------------------------------
# Deterministic parameter init (synthetic; shapes from MMSA.__init__).
# ----------------------------------------------------------------------------
def init_params(key, d_model, num_heads):
    d_head = d_model // num_heads
    ks = jax.random.split(key, 12)
    std = 0.1
    p = {
        "gamma": 1.0 + std * jax.random.normal(ks[0], (1, d_model), jnp.float32),
        "beta": std * jax.random.normal(ks[1], (1, d_model), jnp.float32),
        "wq": std * jax.random.normal(ks[2], (d_model, d_model), jnp.float32),
        "bq": std * jax.random.normal(ks[3], (1, d_model), jnp.float32),
        "wk": std * jax.random.normal(ks[4], (d_model, d_model), jnp.float32),
        "bk": std * jax.random.normal(ks[5], (1, d_model), jnp.float32),
        "wv": std * jax.random.normal(ks[6], (d_model, d_model), jnp.float32),
        "bv": std * jax.random.normal(ks[7], (1, d_model), jnp.float32),
        "wp": std * jax.random.normal(ks[8], (d_model, d_model), jnp.float32),
        "wo": std * jax.random.normal(ks[9], (d_model, d_model), jnp.float32),
        "bo": std * jax.random.normal(ks[10], (1, d_model), jnp.float32),
    }
    ku, kv = jax.random.split(ks[11])
    p["u_bias"] = std * jax.random.normal(ku, (num_heads, d_head), jnp.float32)
    p["v_bias"] = std * jax.random.normal(kv, (num_heads, d_head), jnp.float32)
    return p


if __name__ == "__main__":
    B, S, D, H = 2, 8, 32, 4

    key = jax.random.PRNGKey(0)
    k_in, k_pre, k_par = jax.random.split(key, 3)
    inputs = jax.random.normal(k_in, (B, S, D), jnp.float32)
    pre_block = jax.random.normal(k_pre, (B, S, D), jnp.float32)
    params = init_params(k_par, D, H)

    out = jax.block_until_ready(mmsa_forward(inputs, pre_block, params, H))
    ref = jax.block_until_ready(mmsa_reference(inputs, pre_block, params, H))

    assert out.shape == (B, S, D)
    # bf16 matmul operands (f32 accumulation) + approximate reciprocal in the
    # softmax -> looser tolerance than the pure-f32 reference.
    assert jnp.allclose(out, ref, rtol=3e-2, atol=3e-2), (
        f"max abs diff {jnp.max(jnp.abs(out - ref))}")

    print("KERNEL_OK")
</pallas_src>

<mosaic_0001>
module attributes {stable_mosaic.version = 11 : i64} {
  func.func @_mmsa_kernel(%arg0: i32, %arg1: memref<1x8x32xf32, #tpu.memory_space<vmem>>, %arg2: memref<1x8x32xf32, #tpu.memory_space<vmem>>, %arg3: memref<4x8x8xbf16, #tpu.memory_space<vmem>>, %arg4: memref<1x32xf32, #tpu.memory_space<vmem>>, %arg5: memref<1x32xf32, #tpu.memory_space<vmem>>, %arg6: memref<8x8x32xbf16, #tpu.memory_space<vmem>>, %arg7: memref<8x1x8xf32, #tpu.memory_space<vmem>>, %arg8: memref<4x8x32xbf16, #tpu.memory_space<vmem>>, %arg9: memref<4x1x8xf32, #tpu.memory_space<vmem>>, %arg10: memref<4x1x8xf32, #tpu.memory_space<vmem>>, %arg11: memref<4x1x8xf32, #tpu.memory_space<vmem>>, %arg12: memref<4x8x32xbf16, #tpu.memory_space<vmem>>, %arg13: memref<1x32xf32, #tpu.memory_space<vmem>>, %arg14: memref<3x8x1xf32, #tpu.memory_space<vmem>>, %arg15: memref<4x8x8xf32, #tpu.memory_space<vmem>>, %arg16: memref<2x8x8xf32, #tpu.memory_space<vmem>>, %arg17: memref<1x8x32xf32, #tpu.memory_space<vmem>>) attributes {dimension_semantics = [#tpu.dimension_semantics<parallel>], iteration_bounds = array<i64: 2>, scalar_prefetch = 0 : i64, scratch_operands = 0 : i64, tpu.core_type = #tpu.core_type<tc>, window_params = [{transform_indices = @transform_0, window_bounds = array<i64: 1, 8, 32>}, {transform_indices = @transform_1, window_bounds = array<i64: 1, 8, 32>}, {pipeline_mode = #tpu.pipeline_mode<synchronous>, transform_indices = @transform_2, window_bounds = array<i64: 4, 8, 8>}, {pipeline_mode = #tpu.pipeline_mode<synchronous>, transform_indices = @transform_3, window_bounds = array<i64: 1, 32>}, {pipeline_mode = #tpu.pipeline_mode<synchronous>, transform_indices = @transform_4, window_bounds = array<i64: 1, 32>}, {pipeline_mode = #tpu.pipeline_mode<synchronous>, transform_indices = @transform_5, window_bounds = array<i64: 8, 8, 32>}, {pipeline_mode = #tpu.pipeline_mode<synchronous>, transform_indices = @transform_6, window_bounds = array<i64: 8, 1, 8>}, {pipeline_mode = #tpu.pipeline_mode<synchronous>, transform_indices = @transform_7, window_bounds = array<i64: 4, 8, 32>}, {pipeline_mode = #tpu.pipeline_mode<synchronous>, transform_indices = @transform_8, window_bounds = array<i64: 4, 1, 8>}, {pipeline_mode = #tpu.pipeline_mode<synchronous>, transform_indices = @transform_9, window_bounds = array<i64: 4, 1, 8>}, {pipeline_mode = #tpu.pipeline_mode<synchronous>, transform_indices = @transform_10, window_bounds = array<i64: 4, 1, 8>}, {pipeline_mode = #tpu.pipeline_mode<synchronous>, transform_indices = @transform_11, window_bounds = array<i64: 4, 8, 32>}, {pipeline_mode = #tpu.pipeline_mode<synchronous>, transform_indices = @transform_12, window_bounds = array<i64: 1, 32>}, {pipeline_mode = #tpu.pipeline_mode<synchronous>, transform_indices = @transform_13, window_bounds = array<i64: 3, 8, 1>}, {pipeline_mode = #tpu.pipeline_mode<synchronous>, transform_indices = @transform_14, window_bounds = array<i64: 4, 8, 8>}, {pipeline_mode = #tpu.pipeline_mode<synchronous>, transform_indices = @transform_15, window_bounds = array<i64: 2, 8, 8>}, {transform_indices = @transform_16, window_bounds = array<i64: 1, 8, 32>}]} {
    %c0 = arith.constant 0 : index
    %c0_0 = arith.constant 0 : index
    %c0_1 = arith.constant 0 : index
    %0 = vector.load %arg1[%c0, %c0_0, %c0_1] : memref<1x8x32xf32, #tpu.memory_space<vmem>>, vector<1x8x32xf32>
    %1 = vector.shape_cast %0 : vector<1x8x32xf32> to vector<8x32xf32>
    %c0_2 = arith.constant 0 : index
    %c0_3 = arith.constant 0 : index
    %c0_4 = arith.constant 0 : index
    %2 = vector.load %arg2[%c0_2, %c0_3, %c0_4] : memref<1x8x32xf32, #tpu.memory_space<vmem>>, vector<1x8x32xf32>
    %3 = vector.shape_cast %2 : vector<1x8x32xf32> to vector<8x32xf32>
    %cst = arith.constant dense<0.000000e+00> : vector<8xf32>
    %4 = vector.multi_reduction <add>, %1, %cst [1] : vector<8x32xf32> to vector<8xf32>
    %5 = vector.shape_cast %4 : vector<8xf32> to vector<8x1xf32>
    %cst_5 = arith.constant 3.200000e+01 : f32
    %6 = vector.broadcast %cst_5 : f32 to vector<8x1xf32>
    %7 = arith.divf %5, %6 : vector<8x1xf32>
    %8 = vector.broadcast %7 : vector<8x1xf32> to vector<8x32xf32>
    %9 = arith.subf %1, %8 : vector<8x32xf32>
    %10 = arith.mulf %9, %9 : vector<8x32xf32>
    %cst_6 = arith.constant dense<0.000000e+00> : vector<8xf32>
    %11 = vector.multi_reduction <add>, %10, %cst_6 [1] : vector<8x32xf32> to vector<8xf32>
    %12 = vector.shape_cast %11 : vector<8xf32> to vector<8x1xf32>
    %cst_7 = arith.constant 3.200000e+01 : f32
    %13 = vector.broadcast %cst_7 : f32 to vector<8x1xf32>
    %14 = arith.divf %12, %13 : vector<8x1xf32>
    %15 = vector.broadcast %7 : vector<8x1xf32> to vector<8x32xf32>
    %16 = arith.subf %1, %15 : vector<8x32xf32>
    %cst_8 = arith.constant 9.99999974E-6 : f32
    %17 = vector.broadcast %cst_8 : f32 to vector<8x1xf32>
    %18 = arith.addf %14, %17 : vector<8x1xf32>
    %19 = math.rsqrt %18 : vector<8x1xf32>
    %20 = vector.broadcast %19 : vector<8x1xf32> to vector<8x32xf32>
    %21 = arith.mulf %16, %20 : vector<8x32xf32>
    %c0_9 = arith.constant 0 : index
    %c0_10 = arith.constant 0 : index
    %22 = vector.load %arg4[%c0_9, %c0_10] : memref<1x32xf32, #tpu.memory_space<vmem>>, vector<1x32xf32>
    %23 = vector.broadcast %22 : vector<1x32xf32> to vector<8x32xf32>
    %24 = arith.mulf %21, %23 : vector<8x32xf32>
    %c0_11 = arith.constant 0 : index
    %c0_12 = arith.constant 0 : index
    %25 = vector.load %arg5[%c0_11, %c0_12] : memref<1x32xf32, #tpu.memory_space<vmem>>, vector<1x32xf32>
    %26 = vector.broadcast %25 : vector<1x32xf32> to vector<8x32xf32>
    %27 = arith.addf %24, %26 : vector<8x32xf32>
    %28 = arith.truncf %27 : vector<8x32xf32> to vector<8x32xbf16>
    %29 = vector.shape_cast %28 : vector<8x32xbf16> to vector<1x8x32xbf16>
    %30 = vector.shape_cast %29 : vector<1x8x32xbf16> to vector<1x8x32xbf16>
    %31 = vector.broadcast %30 : vector<1x8x32xbf16> to vector<8x8x32xbf16>
    %32 = arith.truncf %3 : vector<8x32xf32> to vector<8x32xbf16>
    %33 = vector.shape_cast %32 : vector<8x32xbf16> to vector<1x8x32xbf16>
    %34 = vector.shape_cast %33 : vector<1x8x32xbf16> to vector<1x8x32xbf16>
    %35 = vector.broadcast %34 : vector<1x8x32xbf16> to vector<4x8x32xbf16>
    %c0_13 = arith.constant 0 : index
    %c0_14 = arith.constant 0 : index
    %c0_15 = arith.constant 0 : index
    %36 = vector.load %arg6[%c0_13, %c0_14, %c0_15] : memref<8x8x32xbf16, #tpu.memory_space<vmem>>, vector<8x8x32xbf16>
    "tpu.trace_start"() <{level = 10 : i32, message = "hsd,hed->hse"}> : () -> ()
    %cst_16 = arith.constant dense<0.000000e+00> : vector<8x8x8xf32>
    %37 = tpu.matmul %31, %36, %cst_16 {dimension_numbers = #tpu.dot_dimension_numbers<[2], [2], [1], [1], [0, 0, 0, 1, 1, 1], [0], [0]>} : vector<8x8x32xbf16>, vector<8x8x32xbf16>, vector<8x8x8xf32> -> vector<8x8x8xf32>
    "tpu.trace_stop"() : () -> ()
    %c0_17 = arith.constant 0 : index
    %c0_18 = arith.constant 0 : index
    %c0_19 = arith.constant 0 : index
    %38 = vector.load %arg7[%c0_17, %c0_18, %c0_19] : memref<8x1x8xf32, #tpu.memory_space<vmem>>, vector<8x1x8xf32>
    %39 = vector.broadcast %38 : vector<8x1x8xf32> to vector<8x8x8xf32>
    %40 = arith.addf %37, %39 : vector<8x8x8xf32>
    %41 = vector.extract_strided_slice %40 {offsets = [0, 0, 0], sizes = [4, 8, 8], strides = [1, 1, 1]} : vector<8x8x8xf32> to vector<4x8x8xf32>
    %42 = vector.extract_strided_slice %40 {offsets = [4, 0, 0], sizes = [4, 8, 8], strides = [1, 1, 1]} : vector<8x8x8xf32> to vector<4x8x8xf32>
    %c0_20 = arith.constant 0 : index
    %c0_21 = arith.constant 0 : index
    %c0_22 = arith.constant 0 : index
    %43 = vector.load %arg8[%c0_20, %c0_21, %c0_22] : memref<4x8x32xbf16, #tpu.memory_space<vmem>>, vector<4x8x32xbf16>
    "tpu.trace_start"() <{level = 10 : i32, message = "hsd,hed->hse"}> : () -> ()
    %cst_23 = arith.constant dense<0.000000e+00> : vector<4x8x8xf32>
    %44 = tpu.matmul %35, %43, %cst_23 {dimension_numbers = #tpu.dot_dimension_numbers<[2], [2], [1], [1], [0, 0, 0, 1, 1, 1], [0], [0]>} : vector<4x8x32xbf16>, vector<4x8x32xbf16>, vector<4x8x8xf32> -> vector<4x8x8xf32>
    "tpu.trace_stop"() : () -> ()
    %c0_24 = arith.constant 0 : index
    %c0_25 = arith.constant 0 : index
    %c0_26 = arith.constant 0 : index
    %45 = vector.load %arg9[%c0_24, %c0_25, %c0_26] : memref<4x1x8xf32, #tpu.memory_space<vmem>>, vector<4x1x8xf32>
    %46 = vector.broadcast %45 : vector<4x1x8xf32> to vector<4x8x8xf32>
    %47 = arith.addf %44, %46 : vector<4x8x8xf32>
    %c0_27 = arith.constant 0 : index
    %c0_28 = arith.constant 0 : index
    %c0_29 = arith.constant 0 : index
    %48 = vector.load %arg10[%c0_27, %c0_28, %c0_29] : memref<4x1x8xf32, #tpu.memory_space<vmem>>, vector<4x1x8xf32>
    %49 = vector.broadcast %48 : vector<4x1x8xf32> to vector<4x8x8xf32>
    %50 = arith.addf %41, %49 : vector<4x8x8xf32>
    %51 = arith.truncf %50 : vector<4x8x8xf32> to vector<4x8x8xbf16>
    %c0_30 = arith.constant 0 : index
    %c0_31 = arith.constant 0 : index
    %c0_32 = arith.constant 0 : index
    %52 = vector.load %arg11[%c0_30, %c0_31, %c0_32] : memref<4x1x8xf32, #tpu.memory_space<vmem>>, vector<4x1x8xf32>
    %53 = vector.broadcast %52 : vector<4x1x8xf32> to vector<4x8x8xf32>
    %54 = arith.addf %41, %53 : vector<4x8x8xf32>
    %55 = arith.truncf %54 : vector<4x8x8xf32> to vector<4x8x8xbf16>
    %56 = arith.truncf %42 : vector<4x8x8xf32> to vector<4x8x8xbf16>
    "tpu.trace_start"() <{level = 10 : i32, message = "hid,hjd->hij"}> : () -> ()
    %cst_33 = arith.constant dense<0.000000e+00> : vector<4x8x8xf32>
    %57 = tpu.matmul %51, %56, %cst_33 {dimension_numbers = #tpu.dot_dimension_numbers<[2], [2], [1], [1], [0, 0, 0, 1, 1, 1], [0], [0]>} : vector<4x8x8xbf16>, vector<4x8x8xbf16>, vector<4x8x8xf32> -> vector<4x8x8xf32>
    "tpu.trace_stop"() : () -> ()
    %c0_34 = arith.constant 0 : index
    %c0_35 = arith.constant 0 : index
    %c0_36 = arith.constant 0 : index
    %58 = vector.load %arg3[%c0_34, %c0_35, %c0_36] : memref<4x8x8xbf16, #tpu.memory_space<vmem>>, vector<4x8x8xbf16>
    "tpu.trace_start"() <{level = 10 : i32, message = "hid,hjd->hij"}> : () -> ()
    %cst_37 = arith.constant dense<0.000000e+00> : vector<4x8x8xf32>
    %59 = tpu.matmul %55, %58, %cst_37 {dimension_numbers = #tpu.dot_dimension_numbers<[2], [2], [1], [1], [0, 0, 0, 1, 1, 1], [0], [0]>} : vector<4x8x8xbf16>, vector<4x8x8xbf16>, vector<4x8x8xf32> -> vector<4x8x8xf32>
    "tpu.trace_stop"() : () -> ()
    %c0_38 = arith.constant 0 : index
    %c0_39 = arith.constant 0 : index
    %c0_40 = arith.constant 0 : index
    %60 = vector.load %arg15[%c0_38, %c0_39, %c0_40] : memref<4x8x8xf32, #tpu.memory_space<vmem>>, vector<1x8x8xf32>
    %61 = vector.shape_cast %60 : vector<1x8x8xf32> to vector<8x8xf32>
    %62 = vector.shape_cast %61 : vector<8x8xf32> to vector<1x8x8xf32>
    %63 = vector.shape_cast %62 : vector<1x8x8xf32> to vector<1x8x8xf32>
    %64 = vector.broadcast %63 : vector<1x8x8xf32> to vector<4x8x8xf32>
    "tpu.trace_start"() <{level = 10 : i32, message = "hic,hcj->hij"}> : () -> ()
    %cst_41 = arith.constant dense<0.000000e+00> : vector<4x8x8xf32>
    %65 = tpu.matmul %59, %64, %cst_41 {dimension_numbers = #tpu.dot_dimension_numbers<[2], [1], [1], [2], [0, 0, 0, 1, 1, 2], [0], [0]>} : vector<4x8x8xf32>, vector<4x8x8xf32>, vector<4x8x8xf32> -> vector<4x8x8xf32>
    "tpu.trace_stop"() : () -> ()
    %c0_42 = arith.constant 0 : index
    %c0_43 = arith.constant 0 : index
    %c0_44 = arith.constant 0 : index
    %66 = vector.load %arg14[%c0_42, %c0_43, %c0_44] : memref<3x8x1xf32, #tpu.memory_space<vmem>>, vector<1x8x1xf32>
    %67 = vector.shape_cast %66 : vector<1x8x1xf32> to vector<8x1xf32>
    %cst_45 = arith.constant 0.000000e+00 : f32
    %68 = vector.broadcast %cst_45 : f32 to vector<8x1xf32>
    %69 = arith.cmpf one, %67, %68 : vector<8x1xf32>
    %70 = vector.shape_cast %69 : vector<8x1xi1> to vector<1x8x1xi1>
    %71 = vector.shape_cast %70 : vector<1x8x1xi1> to vector<1x8x1xi1>
    %72 = vector.broadcast %71 : vector<1x8x1xi1> to vector<4x8x8xi1>
    %73 = arith.select %72, %65, %59 : vector<4x8x8xi1>, vector<4x8x8xf32>
    %c1 = arith.constant 1 : index
    %c0_46 = arith.constant 0 : index
    %c0_47 = arith.constant 0 : index
    %74 = vector.load %arg15[%c1, %c0_46, %c0_47] : memref<4x8x8xf32, #tpu.memory_space<vmem>>, vector<1x8x8xf32>
    %75 = vector.shape_cast %74 : vector<1x8x8xf32> to vector<8x8xf32>
    %76 = vector.shape_cast %75 : vector<8x8xf32> to vector<1x8x8xf32>
    %77 = vector.shape_cast %76 : vector<1x8x8xf32> to vector<1x8x8xf32>
    %78 = vector.broadcast %77 : vector<1x8x8xf32> to vector<4x8x8xf32>
    "tpu.trace_start"() <{level = 10 : i32, message = "hic,hcj->hij"}> : () -> ()
    %cst_48 = arith.constant dense<0.000000e+00> : vector<4x8x8xf32>
    %79 = tpu.matmul %73, %78, %cst_48 {dimension_numbers = #tpu.dot_dimension_numbers<[2], [1], [1], [2], [0, 0, 0, 1, 1, 2], [0], [0]>} : vector<4x8x8xf32>, vector<4x8x8xf32>, vector<4x8x8xf32> -> vector<4x8x8xf32>
    "tpu.trace_stop"() : () -> ()
    %c1_49 = arith.constant 1 : index
    %c0_50 = arith.constant 0 : index
    %c0_51 = arith.constant 0 : index
    %80 = vector.load %arg14[%c1_49, %c0_50, %c0_51] : memref<3x8x1xf32, #tpu.memory_space<vmem>>, vector<1x8x1xf32>
    %81 = vector.shape_cast %80 : vector<1x8x1xf32> to vector<8x1xf32>
    %cst_52 = arith.constant 0.000000e+00 : f32
    %82 = vector.broadcast %cst_52 : f32 to vector<8x1xf32>
    %83 = arith.cmpf one, %81, %82 : vector<8x1xf32>
    %84 = vector.shape_cast %83 : vector<8x1xi1> to vector<1x8x1xi1>
    %85 = vector.shape_cast %84 : vector<1x8x1xi1> to vector<1x8x1xi1>
    %86 = vector.broadcast %85 : vector<1x8x1xi1> to vector<4x8x8xi1>
    %87 = arith.select %86, %79, %73 : vector<4x8x8xi1>, vector<4x8x8xf32>
    %c2 = arith.constant 2 : index
    %c0_53 = arith.constant 0 : index
    %c0_54 = arith.constant 0 : index
    %88 = vector.load %arg15[%c2, %c0_53, %c0_54] : memref<4x8x8xf32, #tpu.memory_space<vmem>>, vector<1x8x8xf32>
    %89 = vector.shape_cast %88 : vector<1x8x8xf32> to vector<8x8xf32>
    %90 = vector.shape_cast %89 : vector<8x8xf32> to vector<1x8x8xf32>
    %91 = vector.shape_cast %90 : vector<1x8x8xf32> to vector<1x8x8xf32>
    %92 = vector.broadcast %91 : vector<1x8x8xf32> to vector<4x8x8xf32>
    "tpu.trace_start"() <{level = 10 : i32, message = "hic,hcj->hij"}> : () -> ()
    %cst_55 = arith.constant dense<0.000000e+00> : vector<4x8x8xf32>
    %93 = tpu.matmul %87, %92, %cst_55 {dimension_numbers = #tpu.dot_dimension_numbers<[2], [1], [1], [2], [0, 0, 0, 1, 1, 2], [0], [0]>} : vector<4x8x8xf32>, vector<4x8x8xf32>, vector<4x8x8xf32> -> vector<4x8x8xf32>
    "tpu.trace_stop"() : () -> ()
    %c2_56 = arith.constant 2 : index
    %c0_57 = arith.constant 0 : index
    %c0_58 = arith.constant 0 : index
    %94 = vector.load %arg14[%c2_56, %c0_57, %c0_58] : memref<3x8x1xf32, #tpu.memory_space<vmem>>, vector<1x8x1xf32>
    %95 = vector.shape_cast %94 : vector<1x8x1xf32> to vector<8x1xf32>
    %cst_59 = arith.constant 0.000000e+00 : f32
    %96 = vector.broadcast %cst_59 : f32 to vector<8x1xf32>
    %97 = arith.cmpf one, %95, %96 : vector<8x1xf32>
    %98 = vector.shape_cast %97 : vector<8x1xi1> to vector<1x8x1xi1>
    %99 = vector.shape_cast %98 : vector<1x8x1xi1> to vector<1x8x1xi1>
    %100 = vector.broadcast %99 : vector<1x8x1xi1> to vector<4x8x8xi1>
    %101 = arith.select %100, %93, %87 : vector<4x8x8xi1>, vector<4x8x8xf32>
    %c3 = arith.constant 3 : index
    %c0_60 = arith.constant 0 : index
    %c0_61 = arith.constant 0 : index
    %102 = vector.load %arg15[%c3, %c0_60, %c0_61] : memref<4x8x8xf32, #tpu.memory_space<vmem>>, vector<1x8x8xf32>
    %103 = vector.shape_cast %102 : vector<1x8x8xf32> to vector<8x8xf32>
    %104 = vector.shape_cast %103 : vector<8x8xf32> to vector<1x8x8xf32>
    %105 = vector.shape_cast %104 : vector<1x8x8xf32> to vector<1x8x8xf32>
    %106 = vector.broadcast %105 : vector<1x8x8xf32> to vector<4x8x8xf32>
    "tpu.trace_start"() <{level = 10 : i32, message = "hir,hrj->hij"}> : () -> ()
    %cst_62 = arith.constant dense<0.000000e+00> : vector<4x8x8xf32>
    %107 = tpu.matmul %106, %101, %cst_62 {dimension_numbers = #tpu.dot_dimension_numbers<[2], [1], [1], [2], [0, 0, 0, 1, 1, 2], [0], [0]>} : vector<4x8x8xf32>, vector<4x8x8xf32>, vector<4x8x8xf32> -> vector<4x8x8xf32>
    "tpu.trace_stop"() : () -> ()
    %c0_63 = arith.constant 0 : index
    %c0_64 = arith.constant 0 : index
    %c0_65 = arith.constant 0 : index
    %108 = vector.load %arg16[%c0_63, %c0_64, %c0_65] : memref<2x8x8xf32, #tpu.memory_space<vmem>>, vector<1x8x8xf32>
    %109 = vector.shape_cast %108 : vector<1x8x8xf32> to vector<8x8xf32>
    %110 = vector.shape_cast %109 : vector<8x8xf32> to vector<1x8x8xf32>
    %111 = vector.broadcast %110 : vector<1x8x8xf32> to vector<4x8x8xf32>
    %112 = arith.mulf %101, %111 : vector<4x8x8xf32>
    %c1_66 = arith.constant 1 : index
    %c0_67 = arith.constant 0 : index
    %c0_68 = arith.constant 0 : index
    %113 = vector.load %arg16[%c1_66, %c0_67, %c0_68] : memref<2x8x8xf32, #tpu.memory_space<vmem>>, vector<1x8x8xf32>
    %114 = vector.shape_cast %113 : vector<1x8x8xf32> to vector<8x8xf32>
    %115 = vector.shape_cast %114 : vector<8x8xf32> to vector<1x8x8xf32>
    %116 = vector.broadcast %115 : vector<1x8x8xf32> to vector<4x8x8xf32>
    %117 = arith.mulf %107, %116 : vector<4x8x8xf32>
    %118 = arith.addf %112, %117 : vector<4x8x8xf32>
    %119 = arith.addf %57, %118 : vector<4x8x8xf32>
    %cst_69 = arith.constant dense<0xFF800000> : vector<4x8xf32>
    %120 = vector.multi_reduction <maximumf>, %119, %cst_69 [2] : vector<4x8x8xf32> to vector<4x8xf32>
    %121 = vector.shape_cast %120 : vector<4x8xf32> to vector<4x8x1xf32>
    %122 = vector.broadcast %121 : vector<4x8x1xf32> to vector<4x8x8xf32>
    %123 = arith.subf %119, %122 : vector<4x8x8xf32>
    %124 = math.exp %123 : vector<4x8x8xf32>
    %cst_70 = arith.constant dense<0.000000e+00> : vector<4x8xf32>
    %125 = vector.multi_reduction <add>, %124, %cst_70 [2] : vector<4x8x8xf32> to vector<4x8xf32>
    %126 = vector.shape_cast %125 : vector<4x8xf32> to vector<4x8x1xf32>
    %127 = tpu.reciprocal %126 {approx = true} : vector<4x8x1xf32> -> vector<4x8x1xf32>
    %128 = vector.broadcast %127 : vector<4x8x1xf32> to vector<4x8x8xf32>
    %129 = arith.mulf %124, %128 : vector<4x8x8xf32>
    %130 = arith.truncf %129 : vector<4x8x8xf32> to vector<4x8x8xbf16>
    %131 = arith.truncf %47 : vector<4x8x8xf32> to vector<4x8x8xbf16>
    "tpu.trace_start"() <{level = 10 : i32, message = "hij,hjd->hid"}> : () -> ()
    %cst_71 = arith.constant dense<0.000000e+00> : vector<4x8x8xf32>
    %132 = tpu.matmul %130, %131, %cst_71 {dimension_numbers = #tpu.dot_dimension_numbers<[2], [1], [1], [2], [0, 0, 0, 1, 1, 2], [0], [0]>} : vector<4x8x8xbf16>, vector<4x8x8xbf16>, vector<4x8x8xf32> -> vector<4x8x8xf32>
    "tpu.trace_stop"() : () -> ()
    %133 = arith.truncf %132 : vector<4x8x8xf32> to vector<4x8x8xbf16>
    %c0_72 = arith.constant 0 : index
    %c0_73 = arith.constant 0 : index
    %c0_74 = arith.constant 0 : index
    %134 = vector.load %arg12[%c0_72, %c0_73, %c0_74] : memref<4x8x32xbf16, #tpu.memory_space<vmem>>, vector<4x8x32xbf16>
    "tpu.trace_start"() <{level = 10 : i32, message = "hid,hde->hie"}> : () -> ()
    %cst_75 = arith.constant dense<0.000000e+00> : vector<4x8x32xf32>
    %135 = tpu.matmul %133, %134, %cst_75 {dimension_numbers = #tpu.dot_dimension_numbers<[2], [1], [1], [2], [0, 0, 0, 1, 1, 2], [0], [0]>} : vector<4x8x8xbf16>, vector<4x8x32xbf16>, vector<4x8x32xf32> -> vector<4x8x32xf32>
    "tpu.trace_stop"() : () -> ()
    %cst_76 = arith.constant dense<0.000000e+00> : vector<8x32xf32>
    %136 = vector.multi_reduction <add>, %135, %cst_76 [0] : vector<4x8x32xf32> to vector<8x32xf32>
    %c0_77 = arith.constant 0 : index
    %c0_78 = arith.constant 0 : index
    %137 = vector.load %arg13[%c0_77, %c0_78] : memref<1x32xf32, #tpu.memory_space<vmem>>, vector<1x32xf32>
    %138 = vector.broadcast %137 : vector<1x32xf32> to vector<8x32xf32>
    %139 = arith.addf %136, %138 : vector<8x32xf32>
    %c0_79 = arith.constant 0 : index
    %c0_80 = arith.constant 0 : index
    %c0_81 = arith.constant 0 : index
    %140 = vector.load %arg17[%c0_79, %c0_80, %c0_81] : memref<1x8x32xf32, #tpu.memory_space<vmem>>, vector<1x8x32xf32>
    %141 = vector.shape_cast %140 : vector<1x8x32xf32> to vector<8x32xf32>
    %142 = vector.shape_cast %139 : vector<8x32xf32> to vector<1x8x32xf32>
    tpu.vector_store %arg17[%c0_79, %c0_80, %c0_81], %142 {strides = array<i32>} : memref<1x8x32xf32, #tpu.memory_space<vmem>>, vector<1x8x32xf32>,
    return
  }
  func.func @transform_0(%arg0: i32) -> (i32, i32, i32) {
    %c0_i32 = arith.constant 0 : i32
    %c0_i32_0 = arith.constant 0 : i32
    %c0_i32_1 = arith.constant 0 : i32
    return %arg0, %c0_i32, %c0_i32_0 : i32, i32, i32
  }
  func.func @transform_1(%arg0: i32) -> (i32, i32, i32) {
    %c0_i32 = arith.constant 0 : i32
    %c0_i32_0 = arith.constant 0 : i32
    %c0_i32_1 = arith.constant 0 : i32
    return %arg0, %c0_i32, %c0_i32_0 : i32, i32, i32
  }
  func.func @transform_2(%arg0: i32) -> (i32, i32, i32) {
    %c0_i32 = arith.constant 0 : i32
    %c0_i32_0 = arith.constant 0 : i32
    %c0_i32_1 = arith.constant 0 : i32
    %c0_i32_2 = arith.constant 0 : i32
    return %c0_i32, %c0_i32_0, %c0_i32_1 : i32, i32, i32
  }
  func.func @transform_3(%arg0: i32) -> (i32, i32) {
    %c0_i32 = arith.constant 0 : i32
    %c0_i32_0 = arith.constant 0 : i32
    %c0_i32_1 = arith.constant 0 : i32
    return %c0_i32, %c0_i32_0 : i32, i32
  }
  func.func @transform_4(%arg0: i32) -> (i32, i32) {
    %c0_i32 = arith.constant 0 : i32
    %c0_i32_0 = arith.constant 0 : i32
    %c0_i32_1 = arith.constant 0 : i32
    return %c0_i32, %c0_i32_0 : i32, i32
  }
  func.func @transform_5(%arg0: i32) -> (i32, i32, i32) {
    %c0_i32 = arith.constant 0 : i32
    %c0_i32_0 = arith.constant 0 : i32
    %c0_i32_1 = arith.constant 0 : i32
    %c0_i32_2 = arith.constant 0 : i32
    return %c0_i32, %c0_i32_0, %c0_i32_1 : i32, i32, i32
  }
  func.func @transform_6(%arg0: i32) -> (i32, i32, i32) {
    %c0_i32 = arith.constant 0 : i32
    %c0_i32_0 = arith.constant 0 : i32
    %c0_i32_1 = arith.constant 0 : i32
    %c0_i32_2 = arith.constant 0 : i32
    return %c0_i32, %c0_i32_0, %c0_i32_1 : i32, i32, i32
  }
  func.func @transform_7(%arg0: i32) -> (i32, i32, i32) {
    %c0_i32 = arith.constant 0 : i32
    %c0_i32_0 = arith.constant 0 : i32
    %c0_i32_1 = arith.constant 0 : i32
    %c0_i32_2 = arith.constant 0 : i32
    return %c0_i32, %c0_i32_0, %c0_i32_1 : i32, i32, i32
  }
  func.func @transform_8(%arg0: i32) -> (i32, i32, i32) {
    %c0_i32 = arith.constant 0 : i32
    %c0_i32_0 = arith.constant 0 : i32
    %c0_i32_1 = arith.constant 0 : i32
    %c0_i32_2 = arith.constant 0 : i32
    return %c0_i32, %c0_i32_0, %c0_i32_1 : i32, i32, i32
  }
  func.func @transform_9(%arg0: i32) -> (i32, i32, i32) {
    %c0_i32 = arith.constant 0 : i32
    %c0_i32_0 = arith.constant 0 : i32
    %c0_i32_1 = arith.constant 0 : i32
    %c0_i32_2 = arith.constant 0 : i32
    return %c0_i32, %c0_i32_0, %c0_i32_1 : i32, i32, i32
  }
  func.func @transform_10(%arg0: i32) -> (i32, i32, i32) {
    %c0_i32 = arith.constant 0 : i32
    %c0_i32_0 = arith.constant 0 : i32
    %c0_i32_1 = arith.constant 0 : i32
    %c0_i32_2 = arith.constant 0 : i32
    return %c0_i32, %c0_i32_0, %c0_i32_1 : i32, i32, i32
  }
  func.func @transform_11(%arg0: i32) -> (i32, i32, i32) {
    %c0_i32 = arith.constant 0 : i32
    %c0_i32_0 = arith.constant 0 : i32
    %c0_i32_1 = arith.constant 0 : i32
    %c0_i32_2 = arith.constant 0 : i32
    return %c0_i32, %c0_i32_0, %c0_i32_1 : i32, i32, i32
  }
  func.func @transform_12(%arg0: i32) -> (i32, i32) {
    %c0_i32 = arith.constant 0 : i32
    %c0_i32_0 = arith.constant 0 : i32
    %c0_i32_1 = arith.constant 0 : i32
    return %c0_i32, %c0_i32_0 : i32, i32
  }
  func.func @transform_13(%arg0: i32) -> (i32, i32, i32) {
    %c0_i32 = arith.constant 0 : i32
    %c0_i32_0 = arith.constant 0 : i32
    %c0_i32_1 = arith.constant 0 : i32
    %c0_i32_2 = arith.constant 0 : i32
    return %c0_i32, %c0_i32_0, %c0_i32_1 : i32, i32, i32
  }
  func.func @transform_14(%arg0: i32) -> (i32, i32, i32) {
    %c0_i32 = arith.constant 0 : i32
    %c0_i32_0 = arith.constant 0 : i32
    %c0_i32_1 = arith.constant 0 : i32
    %c0_i32_2 = arith.constant 0 : i32
    return %c0_i32, %c0_i32_0, %c0_i32_1 : i32, i32, i32
  }
  func.func @transform_15(%arg0: i32) -> (i32, i32, i32) {
    %c0_i32 = arith.constant 0 : i32
    %c0_i32_0 = arith.constant 0 : i32
    %c0_i32_1 = arith.constant 0 : i32
    %c0_i32_2 = arith.constant 0 : i32
    return %c0_i32, %c0_i32_0, %c0_i32_1 : i32, i32, i32
  }
  func.func @transform_16(%arg0: i32) -> (i32, i32, i32) {
    %c0_i32 = arith.constant 0 : i32
    %c0_i32_0 = arith.constant 0 : i32
    %c0_i32_1 = arith.constant 0 : i32
    return %arg0, %c0_i32, %c0_i32_0 : i32, i32, i32
  }
}

</mosaic_0001>

<bundles_post_ra>
// kernel: tpu_custom_call.1
= control target key start
LH: loop header
LB: loop body
LE: loop exit
PB: predicated region body
PF: predicated region fallthrough
CT: control target
= control target key end

     0   :  { %s5661_s0 = inlined_call_operand.hbm [shape: f32[2,8,32], index: 0, kind: input, shape index: {}]   ;;  %s5662_s1 = inlined_call_operand.hbm [shape: f32[2,8,32], index: 1, kind: input, shape index: {}]   ;;  %s5663_s2 = inlined_call_operand.hbm [shape: bf16[4,8,8], index: 2, kind: input, shape index: {}]   ;;  %s5664_s3 = inlined_call_operand.hbm [shape: f32[1,32], index: 3, kind: input, shape index: {}]   ;;  %s5665_s4 = inlined_call_operand.hbm [shape: f32[1,32], index: 4, kind: input, shape index: {}]   ;;  %s5666_s5 = inlined_call_operand.vmem [shape: bf16[8,8,32], index: 5, kind: input, shape index: {}]   ;;  %s5667_s6 = inlined_call_operand.hbm [shape: f32[8,1,8], index: 6, kind: input, shape index: {}]   ;;  %s5668_s7 = inlined_call_operand.hbm [shape: bf16[4,8,32], index: 7, kind: input, shape index: {}]   ;;  %s5669_s8 = inlined_call_operand.hbm [shape: f32[4,1,8], index: 8, kind: input, shape index: {}]   ;;  %s5670_s9 = inlined_call_operand.hbm [shape: f32[4,1,8], index: 9, kind: input, shape index: {}]   ;;  %s5671_s10 = inlined_call_operand.hbm [shape: f32[4,1,8], index: 10, kind: input, shape index: {}]   ;;  %s5672_s11 = inlined_call_operand.hbm [shape: bf16[4,8,32], index: 11, kind: input, shape index: {}]   ;;  %s5673_s12 = inlined_call_operand.hbm [shape: f32[1,32], index: 12, kind: input, shape index: {}]   ;;  %s5674_s13 = inlined_call_operand.vmem [shape: f32[3,8,1], index: 13, kind: input, shape index: {}]   ;;  %s5675_s14 = inlined_call_operand.vmem [shape: f32[4,8,8], index: 14, kind: input, shape index: {}]   ;;  %s5676_s15 = inlined_call_operand.vmem [shape: f32[2,8,8], index: 15, kind: input, shape index: {}]   ;;  %s5677_s16 = inlined_call_operand.hbm [shape: f32[2,8,32], index: 16, kind: output, shape index: {}]  }
   0x1   :  { %5695 = sst [smem:[#allocation33_spill]] %s5661_s0 }
   0x2   :  { %5696 = sst [smem:[#allocation34_spill]] %s5662_s1 }
   0x3   :  { %5697 = sst [smem:[#allocation35_spill]] %s5663_s2 }
   0x4   :  { %5698 = sst [smem:[#allocation36_spill]] %s5664_s3 }
   0x5   :  { %5699 = sst [smem:[#allocation37_spill]] %s5665_s4 }
   0x6   :  { %5700 = sst [smem:[#allocation38_spill]] %s5666_s5 }
   0x7   :  { %5701 = sst [smem:[#allocation39_spill]] %s5667_s6 }
   0x8   :  { %5702 = sst [smem:[#allocation40_spill]] %s5668_s7 }
   0x9   :  { %5703 = sst [smem:[#allocation41_spill]] %s5669_s8 }
   0xa   :  { %5704 = sst [smem:[#allocation42_spill]] %s5670_s9 }
   0xb   :  { %5705 = sst [smem:[#allocation43_spill]] %s5674_s13 }
   0xc   :  { %5706 = sst [smem:[#allocation44_spill]] %s5675_s14 }
   0xd   :  { %5707 = sst [smem:[#allocation45_spill]] %s5676_s15 }
   0xe   :  { %5708 = sst [smem:[#allocation46_spill]] %s5677_s16 }
   0xf   :  { %21 = vsyncpa [#allocation3], 0 }
  0x10   :  { %23 = vsyncpa [#allocation3 + $0x1], 0 }
  0x11   :  { %24 = vsyncpa [#allocation6], 0 }
  0x12   :  { %26 = vsyncpa [#allocation6 + $0x1], 0 }
  0x13   :  { %27 = vsyncpa [#allocation9], 0 }
  0x14   :  { %28 = vsyncpa [#allocation12], 0 }
  0x15   :  { %29 = vsyncpa [#allocation15], 0 }
  0x16   :  { %30 = vsyncpa [#allocation18], 0 }
  0x17   :  { %31 = vsyncpa [#allocation21], 0 }
  0x18   :  { %32 = vsyncpa [#allocation4], 0 }
  0x19   :  { %34 = vsyncpa [#allocation4 + $0x1], 0  ;;  %s4843_s21 = smov 0   ;;  %s4845_s22 = smov 0  }
  0x1a   :  { %s4847_s23 = smov 0   ;;  %s4849_s24 = smov 0  }
  0x1b LB: > { %s4738_s25 = smov [#allocation7]   ;;  %s4864_s27 = sadd.s32 4294967295, %s4736_s24   ;;  %s4736_s24 = sphi %s4849_s24, %s5757_s24   ;;  %s4732_s23 = sphi %s4847_s23, %s5756_s23   ;;  %s4728_s22 = sphi %s4845_s22, %s5755_s22   ;;  %s4724_s21 = sphi %s4843_s21, %s5754_s21  }
  0x1c   : > { %s429_s26 = sshll.u32 %s4738_s25, 4  ;;  %p3680_p0 = scmp.ge.s32.totalorder %s4736_s24, 1  ;;  %s4869_s26 = int_to_ptr.vmem [resolvable:$true] %s429_s26 }
  0x1d   : > { %p5690_p1 = scmp.eq.s32.totalorder %s4864_s27, 0  ;;  %p417_p2 = scmp.lt.s32.totalorder %s4736_s24, 3 }
  0x1e   : > { %s4739_s29 = smov [#allocation8]   ;;  %s4740_s17 = smov [#allocation11]  }
  0x1f   : > { %p4871_p3 = pnand %p3680_p0, %p417_p2  ;;  %s443_s30 = sshll.u32 %s4739_s29, 4  ;;  %s4884_s30 = int_to_ptr.vmem [resolvable:$true] %s443_s30 }
  0x20   : > { %s467_s18 = sshll.u32 %s4740_s17, 4  ;;  %s5712_s2 = sld [smem:[#allocation35_spill]]  ;;  %s4886_s18 = int_to_ptr.vmem [resolvable:$true] %s467_s18 }
  0x21   : > { %s5709_s28 = scalar_select %p4871_p3, 1, 0 }
  0x22   : > { %p4169_p5 = pneg %p4871_p3 }
  0x23   : > { %5710 = sst [smem:[#allocation32_spill]] %s5709_s28 }
  0x24   : > { %p4880_p6 = pnand %p4169_p5, %p5690_p1 }
  0x26   : > { %s4302_s25 = scalar_lea.hbm %s5712_s2, 256  ;;  %p4896_p8 = pneg %p4880_p6 }
  0x27   : > { %p4303_p7 = scmp.ne.s32.totalorder %s5712_s2, %s4302_s25  ;;  %p4309_p11 = scmp.lt.u32.totalorder %s4302_s25, %s5712_s2 }
  0x29   : > { %p4305_p9 = pnand %p4896_p8, %p4303_p7 }
  0x2b   : > { %p4306_p10 = pneg %p4305_p9 }
  0x2d   : > { %p4311_p12 = pnand %p4309_p11, %p4306_p10 }
  0x2f   : > { %4314 = shalt.err (!%p4311_p12)
}
  0x30   : > { %s4315_s15 = scalar_lea.vmem %s4869_s26, 256  ;;  %p4323_p5 = scmp.lt.s32.totalorder %s4869_s26, %s4869_s26 }
  0x31   : > { %p4316_p13 = scmp.ne.s32.totalorder %s4869_s26, %s4315_s15  ;;  %p4324_p4 = scmp.lt.s32.totalorder %s4315_s15, %s4315_s15 }
  0x33   : > { %p4318_p0 = pnand %p4316_p13, %p4896_p8  ;;  %p4325_p7 = por %p4324_p4, %p4323_p5 }
  0x35   : > { %p4319_p2 = pneg %p4318_p0 }
  0x37   : > { %p4326_p9 = pnand %p4325_p7, %p4319_p2 }
  0x39   : > { %4329 = shalt.err (!%p4326_p9)
}
  0x3a   : > { %s5686_s16 = smov 64   ;;  %s5688_s13 = smov 4  }
  0x3b   : > { %4172 = dma.hbm_to_vmem [thread:$0]  (!%p4880_p6), %s5712_s2, 256, %s4869_s26, [#allocation6], %s5686_s16, %s5686_s16, %s5688_s13  }
  0x3c   : > { %s5714_s3 = sld [smem:[#allocation36_spill]] }
  0x42   : > { %s4330_s15 = scalar_lea.hbm %s5714_s3, 16 }
  0x43   : > { %p4331_p4 = scmp.ne.s32.totalorder %s5714_s3, %s4330_s15  ;;  %p4337_p12 = scmp.lt.u32.totalorder %s4330_s15, %s5714_s3 }
  0x45   : > { %p4333_p10 = pnand %p4331_p4, %p4896_p8 }
  0x47   : > { %p4334_p11 = pneg %p4333_p10 }
  0x49   : > { %p4339_p13 = pnand %p4337_p12, %p4334_p11 }
  0x4b   : > { %4342 = shalt.err (!%p4339_p13)
}
  0x4c   : > { %s4343_s26 = scalar_lea.vmem %s4884_s30, 16  ;;  %s4350_s5 = scalar_lea.vmem %s4884_s30, 32 }
  0x4d   : > { %p4344_p0 = scmp.ne.s32.totalorder %s4884_s30, %s4343_s26  ;;  %p4351_p7 = scmp.lt.s32.totalorder %s4884_s30, %s4884_s30 }
  0x4e   : > { %p4352_p9 = scmp.lt.s32.totalorder %s4350_s5, %s4343_s26 }
  0x4f   : > { %p4346_p2 = pnand %p4344_p0, %p4896_p8 }
  0x50   : > { %p4353_p4 = por %p4352_p9, %p4351_p7 }
  0x51   : > { %p4347_p5 = pneg %p4346_p2 }
  0x53   : > { %p4354_p10 = pnand %p4353_p4, %p4347_p5 }
  0x55   : > { %4357 = shalt.err (!%p4354_p10)
}
  0x56   : > { %4175 = dma.hbm_to_vmem [thread:$0]  (!%p4880_p6), %s5714_s3, 16, %s4884_s30, [#allocation9]  }
  0x57   : > { %s5715_s6 = sld [smem:[#allocation39_spill]] }
  0x5d   : > { %s4358_s20 = scalar_lea.hbm %s5715_s6, 128 }
  0x5e   : > { %p4359_p11 = scmp.ne.s32.totalorder %s5715_s6, %s4358_s20  ;;  %p4365_p0 = scmp.lt.u32.totalorder %s4358_s20, %s5715_s6 }
  0x60   : > { %p4361_p12 = pnand %p4359_p11, %p4896_p8 }
  0x62   : > { %p4362_p13 = pneg %p4361_p12 }
  0x64   : > { %p4367_p2 = pnand %p4365_p0, %p4362_p13 }
  0x66   : > { %4370 = shalt.err (!%p4367_p2)
}
  0x67   : > { %s4371_s30 = scalar_lea.vmem %s4886_s18, 128  ;;  %p4379_p4 = scmp.lt.s32.totalorder %s4886_s18, %s4886_s18 }
  0x68   : > { %p4372_p5 = scmp.ne.s32.totalorder %s4886_s18, %s4371_s30  ;;  %p4380_p10 = scmp.lt.s32.totalorder %s4371_s30, %s4371_s30 }
  0x6a   : > { %p4374_p7 = pnand %p4372_p5, %p4896_p8  ;;  %p4381_p11 = por %p4380_p10, %p4379_p4 }
  0x6c   : > { %p4375_p9 = pneg %p4374_p7 }
  0x6e   : > { %p4382_p12 = pnand %p4381_p11, %p4375_p9 }
  0x70   : > { %4385 = shalt.err (!%p4382_p12)
}
  0x71   : > { %s5692_s5 = smov 16   ;;  %s4744_s1 = smov 1  }
  0x72   : > { %4181 = dma.hbm_to_vmem [thread:$0]  (!%p4880_p6), %s5715_s6, 128, %s4886_s18, [#allocation12], %s5692_s5, %s5692_s5, %s4744_s1  }
  0x73   : > { %s4745_s19 = smov [#allocation14]   ;;  %s4746_s25 = smov [#allocation17]  }
  0x74   : > { %s493_s20 = sshll.u32 %s4745_s19, 4  ;;  %s519_s17 = sshll.u32 %s4746_s25, 4  ;;  %s494_s20 = int_to_ptr.vmem [resolvable:$true] %s493_s20  ;;  %s520_s17 = int_to_ptr.vmem [resolvable:$true] %s519_s17 }
  0x75   : > { %s5716_s8 = sld [smem:[#allocation41_spill]] }
  0x7b   : > { %s4386_s30 = scalar_lea.hbm %s5716_s8, 64 }
  0x7c   : > { %p4387_p13 = scmp.ne.s32.totalorder %s5716_s8, %s4386_s30  ;;  %p4393_p5 = scmp.lt.u32.totalorder %s4386_s30, %s5716_s8 }
  0x7e   : > { %p4389_p0 = pnand %p4387_p13, %p4896_p8 }
  0x80   : > { %p4390_p2 = pneg %p4389_p0 }
  0x82   : > { %p4395_p7 = pnand %p4393_p5, %p4390_p2 }
  0x84   : > { %4398 = shalt.err (!%p4395_p7)
}
  0x85   : > { %s4399_s18 = scalar_lea.vmem %s494_s20, 64  ;;  %p4407_p11 = scmp.lt.s32.totalorder %s494_s20, %s494_s20 }
  0x86   : > { %p4400_p9 = scmp.ne.s32.totalorder %s494_s20, %s4399_s18  ;;  %p4408_p12 = scmp.lt.s32.totalorder %s4399_s18, %s4399_s18 }
  0x88   : > { %p4402_p4 = pnand %p4400_p9, %p4896_p8  ;;  %p4409_p1 = por %p4408_p12, %p4407_p11 }
  0x8a   : > { %p4403_p10 = pneg %p4402_p4 }
  0x8c   : > { %p4410_p3 = pnand %p4409_p1, %p4403_p10 }
  0x8e   : > { %4413 = shalt.err (!%p4410_p3)
}
  0x8f   : > { %4187 = dma.hbm_to_vmem [thread:$0]  (!%p4880_p6), %s5716_s8, 64, %s494_s20, [#allocation15], %s5692_s5, %s5692_s5, %s4744_s1  }
  0x90   : > { %s4414_s14 = scalar_lea.hbm %s5671_s10, 64 }
  0x91   : > { %p4415_p1 = scmp.ne.s32.totalorder %s5671_s10, %s4414_s14  ;;  %p4421_p0 = scmp.lt.u32.totalorder %s4414_s14, %s5671_s10 }
  0x93   : > { %p4417_p3 = pnand %p4415_p1, %p4896_p8 }
  0x95   : > { %p4418_p13 = pneg %p4417_p3 }
  0x97   : > { %p4423_p2 = pnand %p4421_p0, %p4418_p13 }
  0x99   : > { %4426 = shalt.err (!%p4423_p2)
}
  0x9a   : > { %s4427_s26 = scalar_lea.vmem %s520_s17, 64  ;;  %p4435_p4 = scmp.lt.s32.totalorder %s520_s17, %s520_s17 }
  0x9b   : > { %p4428_p5 = scmp.ne.s32.totalorder %s520_s17, %s4427_s26  ;;  %p4436_p10 = scmp.lt.s32.totalorder %s4427_s26, %s4427_s26 }
  0x9d   : > { %p4430_p7 = pnand %p4428_p5, %p4896_p8  ;;  %p4437_p11 = por %p4436_p10, %p4435_p4 }
  0x9f   : > { %p4431_p9 = pneg %p4430_p7 }
  0xa1   : > { %p4438_p12 = pnand %p4437_p11, %p4431_p9 }
  0xa3   : > { %4441 = shalt.err (!%p4438_p12)
}
  0xa4   : > { %4193 = dma.hbm_to_vmem [thread:$0]  (!%p4880_p6), %s5671_s10, 64, %s520_s17, [#allocation18], %s5692_s5, %s5692_s5, %s4744_s1  }
  0xa5   : > { %s4747_s18 = smov [#allocation10]   ;;  %s4748_s3 = smov [#allocation13]  }
  0xa6   : > { %s454_s2 = sshll.u32 %s4747_s18, 4  ;;  %s480_s16 = sshll.u32 %s4748_s3, 4  ;;  %s455_s2 = int_to_ptr.vmem [resolvable:$true] %s454_s2  ;;  %s481_s16 = int_to_ptr.vmem [resolvable:$true] %s480_s16 }
  0xa7   : > { %s5717_s4 = sld [smem:[#allocation37_spill]] }
  0xad   : > { %s4442_s28 = scalar_lea.hbm %s5717_s4, 16 }
  0xae   : > { %p4443_p1 = scmp.ne.s32.totalorder %s5717_s4, %s4442_s28  ;;  %p4449_p0 = scmp.lt.u32.totalorder %s4442_s28, %s5717_s4 }
  0xb0   : > { %p4445_p3 = pnand %p4443_p1, %p4896_p8 }
  0xb2   : > { %p4446_p13 = pneg %p4445_p3 }
  0xb4   : > { %p4451_p2 = pnand %p4449_p0, %p4446_p13 }
  0xb6   : > { %4454 = shalt.err (!%p4451_p2)
}
  0xb7   : > { %s4455_s17 = scalar_lea.vmem %s455_s2, 16  ;;  %s4462_s20 = scalar_lea.vmem %s455_s2, 32 }
  0xb8   : > { %p4456_p5 = scmp.ne.s32.totalorder %s455_s2, %s4455_s17  ;;  %p4463_p4 = scmp.lt.s32.totalorder %s455_s2, %s455_s2 }
  0xb9   : > { %p4464_p10 = scmp.lt.s32.totalorder %s4462_s20, %s4455_s17 }
  0xba   : > { %p4458_p7 = pnand %p4456_p5, %p4896_p8 }
  0xbb   : > { %p4465_p11 = por %p4464_p10, %p4463_p4 }
  0xbc   : > { %p4459_p9 = pneg %p4458_p7 }
  0xbe   : > { %p4466_p12 = pnand %p4465_p11, %p4459_p9 }
  0xc0   : > { %4469 = shalt.err (!%p4466_p12)
}
  0xc1   : > { %4178 = dma.hbm_to_vmem [thread:$0]  (!%p4880_p6), %s5717_s4, 16, %s455_s2, [#allocation9]  }
  0xc2   : > { %s5718_s7 = sld [smem:[#allocation40_spill]] }
  0xc8   : > { %s4470_s14 = scalar_lea.hbm %s5718_s7, 256 }
  0xc9   : > { %p4471_p1 = scmp.ne.s32.totalorder %s5718_s7, %s4470_s14  ;;  %p4477_p0 = scmp.lt.u32.totalorder %s4470_s14, %s5718_s7 }
  0xcb   : > { %p4473_p3 = pnand %p4471_p1, %p4896_p8 }
  0xcd   : > { %p4474_p13 = pneg %p4473_p3 }
  0xcf   : > { %p4479_p2 = pnand %p4477_p0, %p4474_p13 }
  0xd1   : > { %4482 = shalt.err (!%p4479_p2)
}
  0xd2   : > { %s4483_s26 = scalar_lea.vmem %s481_s16, 256  ;;  %p4491_p4 = scmp.lt.s32.totalorder %s481_s16, %s481_s16 }
  0xd3   : > { %p4484_p5 = scmp.ne.s32.totalorder %s481_s16, %s4483_s26  ;;  %p4492_p10 = scmp.lt.s32.totalorder %s4483_s26, %s4483_s26 }
  0xd5   : > { %p4486_p7 = pnand %p4484_p5, %p4896_p8  ;;  %p4493_p11 = por %p4492_p10, %p4491_p4 }
  0xd7   : > { %p4487_p9 = pneg %p4486_p7 }
  0xd9   : > { %p4494_p12 = pnand %p4493_p11, %p4487_p9 }
  0xdb   : > { %4497 = shalt.err (!%p4494_p12)
}
  0xdc   : > { %s5719_s2 = smov 4   ;;  %s5720_s17 = smov 64  }
  0xdd   : > { %4184 = dma.hbm_to_vmem [thread:$0]  (!%p4880_p6), %s5718_s7, 256, %s481_s16, [#allocation12], %s5720_s17, %s5720_s17, %s5719_s2  }
  0xde   : > { %s4749_s18 = smov [#allocation16]   ;;  %s4750_s13 = smov [#allocation19]  }
  0xdf   : > { %s506_s3 = sshll.u32 %s4749_s18, 4  ;;  %s532_s14 = sshll.u32 %s4750_s13, 4  ;;  %s507_s3 = int_to_ptr.vmem [resolvable:$true] %s506_s3  ;;  %s533_s14 = int_to_ptr.vmem [resolvable:$true] %s532_s14 }
  0xe0   : > { %s5721_s9 = sld [smem:[#allocation42_spill]] }
  0xe6   : > { %s4498_s25 = scalar_lea.hbm %s5721_s9, 64 }
  0xe7   : > { %p4499_p1 = scmp.ne.s32.totalorder %s5721_s9, %s4498_s25  ;;  %p4505_p0 = scmp.lt.u32.totalorder %s4498_s25, %s5721_s9 }
  0xe9   : > { %p4501_p3 = pnand %p4499_p1, %p4896_p8 }
  0xeb   : > { %p4502_p13 = pneg %p4501_p3 }
  0xed   : > { %p4507_p2 = pnand %p4505_p0, %p4502_p13 }
  0xef   : > { %4510 = shalt.err (!%p4507_p2)
}
  0xf0   : > { %s4511_s16 = scalar_lea.vmem %s507_s3, 64  ;;  %p4519_p4 = scmp.lt.s32.totalorder %s507_s3, %s507_s3 }
  0xf1   : > { %p4512_p5 = scmp.ne.s32.totalorder %s507_s3, %s4511_s16  ;;  %p4520_p10 = scmp.lt.s32.totalorder %s4511_s16, %s4511_s16 }
  0xf3   : > { %p4514_p7 = pnand %p4512_p5, %p4896_p8  ;;  %p4521_p11 = por %p4520_p10, %p4519_p4 }
  0xf5   : > { %p4515_p9 = pneg %p4514_p7 }
  0xf7   : > { %p4522_p12 = pnand %p4521_p11, %p4515_p9 }
  0xf9   : > { %4525 = shalt.err (!%p4522_p12)
}
  0xfa   : > { %s5722_s30 = smov 16   ;;  %s4526_s19 = scalar_lea.hbm %s5672_s11, 256 }
  0xfb   : > { %4190 = dma.hbm_to_vmem [thread:$0]  (!%p4880_p6), %s5721_s9, 64, %s507_s3, [#allocation15], %s5722_s30, %s5722_s30, %s4744_s1  }
  0xfc   : > { %p4527_p1 = scmp.ne.s32.totalorder %s5672_s11, %s4526_s19  ;;  %p4533_p0 = scmp.lt.u32.totalorder %s4526_s19, %s5672_s11 }
  0xfe   : > { %p4529_p3 = pnand %p4527_p1, %p4896_p8 }
 0x100   : > { %p4530_p13 = pneg %p4529_p3 }
 0x102   : > { %p4535_p2 = pnand %p4533_p0, %p4530_p13 }
 0x104   : > { %4538 = shalt.err (!%p4535_p2)
}
 0x105   : > { %s4539_s16 = scalar_lea.vmem %s533_s14, 256  ;;  %p4547_p4 = scmp.lt.s32.totalorder %s533_s14, %s533_s14 }
 0x106   : > { %p4540_p5 = scmp.ne.s32.totalorder %s533_s14, %s4539_s16  ;;  %p4548_p10 = scmp.lt.s32.totalorder %s4539_s16, %s4539_s16 }
 0x108   : > { %p4542_p7 = pnand %p4540_p5, %p4896_p8  ;;  %p4549_p11 = por %p4548_p10, %p4547_p4 }
 0x10a   : > { %p4543_p9 = pneg %p4542_p7 }
 0x10c   : > { %p4550_p12 = pnand %p4549_p11, %p4543_p9 }
 0x10e   : > { %4553 = shalt.err (!%p4550_p12)
}
 0x10f   : > { %4196 = dma.hbm_to_vmem [thread:$0]  (!%p4880_p6), %s5672_s11, 256, %s533_s14, [#allocation18], %s5720_s17, %s5720_s17, %s5719_s2  }
 0x110   : > { %s4751_s30 = smov [#allocation20]   ;;  %s4554_s28 = scalar_lea.hbm %s5673_s12, 16 }
 0x111   : > { %s546_s5 = sshll.u32 %s4751_s30, 4  ;;  %p4555_p1 = scmp.ne.s32.totalorder %s5673_s12, %s4554_s28  ;;  %s547_s5 = int_to_ptr.vmem [resolvable:$true] %s546_s5 }
 0x112   : > { %p4561_p0 = scmp.lt.u32.totalorder %s4554_s28, %s5673_s12 }
 0x113   : > { %p4557_p3 = pnand %p4555_p1, %p4896_p8 }
 0x115   : > { %p4558_p13 = pneg %p4557_p3 }
 0x117   : > { %p4563_p2 = pnand %p4561_p0, %p4558_p13 }
 0x119   : > { %4566 = shalt.err (!%p4563_p2)
}
 0x11a   : > { %s4567_s2 = scalar_lea.vmem %s547_s5, 16  ;;  %s4574_s17 = scalar_lea.vmem %s547_s5, 32 }
 0x11b   : > { %p4568_p5 = scmp.ne.s32.totalorder %s547_s5, %s4567_s2  ;;  %p4575_p4 = scmp.lt.s32.totalorder %s547_s5, %s547_s5 }
 0x11c   : > { %p4576_p10 = scmp.lt.s32.totalorder %s4574_s17, %s4567_s2 }
 0x11d   : > { %p4570_p7 = pnand %p4568_p5, %p4896_p8 }
 0x11e   : > { %p4577_p11 = por %p4576_p10, %p4575_p4 }
 0x11f   : > { %p4571_p9 = pneg %p4570_p7 }
 0x121   : > { %p4578_p12 = pnand %p4577_p11, %p4571_p9 }
 0x123   : > { %4581 = shalt.err (!%p4578_p12)
}
 0x124   : > { %4199 = dma.hbm_to_vmem [thread:$0]  (!%p4880_p6), %s5673_s12, 16, %s547_s5, [#allocation21]  }
 0x125   : > { %s3679_s29 = sadd.s32 4294967294, %s4736_s24   ;;  %s5113_s0 = sadd.s32 1, %s4736_s24  }
 0x126   : > { %s44_s16 = ssub.s32 %s4736_s24, %s5113_s0  ;;  %s47_s1 = sadd.s32 1, %s4732_s23 }
 0x127   : > { %p45_p8 = scmp.eq.s32.totalorder %s44_s16, 0  ;;  %p54_p1 = scmp.ne.s32.totalorder %s4732_s23, %s4728_s22 }
 0x128   : > { %p55_p3 = scmp.eq.s32.totalorder %s4736_s24, 0  ;;  %p60_p13 = scmp.ne.s32.totalorder %s4728_s22, %s4724_s21 }
 0x129   : > { %s5124_s3 = scalar_select %p45_p8, %s4732_s23, %s47_s1  }
 0x12a   : > { %p5126_p0 = por %p55_p3, %p54_p1  ;;  %p5724_p2 = scmp.eq.s32.totalorder %s4864_s27, 0 }
 0x12b   : > { %p404_p5 = scmp.eq.s32.totalorder %s4864_s27, 1  ;;  %p410_p7 = scmp.eq.s32.totalorder %s3679_s29, 1 }
 0x12c   : > { %p5132_p6 = por %p5724_p2, %p60_p13  ;;  %p4221_p9 = scmp.lt.s32.totalorder %s4736_s24, 2 }
 0x12d   : > { %s566_s18 = sand.u32 1, %s4732_s23   ;;  %p5139_p4 = por %p404_p5, %p54_p1 }
 0x12e   : > { %s5725_s5 = scalar_select %p5132_p6, 1, 0 }
 0x12f   : > { %s5726_s13 = scalar_select %p5139_p4, 1, 0 }
 0x130   : > { %p5143_p10 = por %p410_p7, %p60_p13  ;;  %s5147_s19 = sshll.u32 %s566_s18, 3 }
 0x131   : > { %s3693_s25 = sshll.u32 %s4736_s24, 7  ;;  %s5728_s2 = sld [smem:[#allocation33_spill]] }
 0x132   : > { %s5727_s28 = scalar_select %p5143_p10, 1, 0 }
 0x133   : > { %s570_s14 = scalar_lea.vmem [#allocation2], %s5147_s19  ;;  %p5160_p11 = pnand %p4221_p9, %p5126_p0 }
 0x134   : > { %s577_s20 = sshll.u32 %s570_s14, 4  ;;  %s5730_s4 = sld [smem:[#allocation34_spill]]  ;;  %s5156_s20 = int_to_ptr.vmem [resolvable:$true] %s577_s20 }
 0x135   : > { %s584_s26 = sand.u32 1, %s4736_s24   ;;  %s567_s6 = scalar_lea.sflag [#allocation3], %s566_s18 }
 0x136   : > { %p4584_p8 = pneg %p5160_p11 }
 0x137   : > { %s5153_s17 = scalar_lea.hbm %s5728_s2, %s3693_s25  ;;  %s4587_s8 = scalar_lea.hbm %s5728_s2, 256 }
 0x138   : > { %s4582_s7 = scalar_lea.hbm %s5153_s17, 128  ;;  %p4588_p13 = scmp.lt.u32.totalorder %s5153_s17, %s5728_s2 }
 0x139   : > { %p4583_p12 = scmp.ne.s32.totalorder %s5153_s17, %s4582_s7  ;;  %p4589_p0 = scmp.lt.u32.totalorder %s4587_s8, %s4582_s7 }
 0x13a   : > { %s5167_s15 = scalar_lea.hbm %s5730_s4, %s3693_s25  ;;  %p4591_p5 = scmp.lt.u32.totalorder %s4582_s7, %s5153_s17 }
 0x13b   : > { %p4585_p1 = pnand %p4584_p8, %p4583_p12  ;;  %p4590_p2 = por %p4589_p0, %p4588_p13 }
 0x13d   : > { %p4586_p3 = pneg %p4585_p1  ;;  %p4592_p7 = por %p4591_p5, %p4590_p2 }
 0x13f   : > { %p4593_p9 = pnand %p4592_p7, %p4586_p3 }
 0x141   : > { %4596 = shalt.err (!%p4593_p9)
}
 0x142   : > { %s4597_s18 = scalar_lea.vmem %s5156_s20, 128  ;;  %s4752_s25 = smov [#allocation2]  }
 0x143   : > { %p4598_p12 = scmp.ne.s32.totalorder %s5156_s20, %s4597_s18  ;;  %s4602_s1 = sshll.u32 %s4752_s25, 4  ;;  %s4603_s1 = int_to_ptr.vmem [resolvable:$false] %s4602_s1 }
 0x144   : > { %s4604_s9 = scalar_lea.vmem %s4603_s1, 256  ;;  %p4605_p4 = scmp.lt.s32.totalorder %s5156_s20, %s4603_s1 }
 0x145   : > { %p4600_p1 = pnand %p4598_p12, %p4584_p8  ;;  %p4606_p13 = scmp.lt.s32.totalorder %s4604_s9, %s4597_s18 }
 0x147   : > { %p4601_p10 = pneg %p4600_p1  ;;  %p4607_p0 = por %p4606_p13, %p4605_p4 }
 0x149   : > { %p4608_p2 = pnand %p4607_p0, %p4601_p10 }
 0x14b   : > { %4611 = shalt.err (!%p4608_p2)
}
 0x14c   : > { %4203 = dma.hbm_to_vmem [thread:$0]  (!%p5160_p11), %s5153_s17, 128, %s5156_s20, %s567_s6  }
 0x14d   : > { %s588_s7 = scalar_lea.vmem [#allocation5], %s5147_s19  ;;  %s585_s30 = scalar_lea.sflag [#allocation6], %s584_s26 }
 0x14e   : > { %s595_s8 = sshll.u32 %s588_s7, 4  ;;  %s4612_s14 = scalar_lea.hbm %s5167_s15, 128  ;;  %s596_s8 = int_to_ptr.vmem [resolvable:$true] %s595_s8 }
 0x14f   : > { %p4613_p4 = scmp.ne.s32.totalorder %s5167_s15, %s4612_s14  ;;  %s4617_s25 = scalar_lea.hbm %s5730_s4, 256 }
 0x150   : > { %p4618_p5 = scmp.lt.u32.totalorder %s5167_s15, %s5730_s4  ;;  %p4619_p7 = scmp.lt.u32.totalorder %s4617_s25, %s4612_s14 }
 0x151   : > { %p4615_p10 = pnand %p4613_p4, %p4584_p8  ;;  %p4621_p12 = scmp.lt.u32.totalorder %s4612_s14, %s5167_s15 }
 0x152   : > { %p4620_p9 = por %p4619_p7, %p4618_p5 }
 0x153   : > { %p4616_p3 = pneg %p4615_p10 }
 0x154   : > { %p4622_p1 = por %p4621_p12, %p4620_p9 }
 0x156   : > { %p4623_p13 = pnand %p4622_p1, %p4616_p3 }
 0x158   : > { %4626 = shalt.err (!%p4623_p13)
}
 0x159   : > { %s4627_s6 = scalar_lea.vmem %s596_s8, 128  ;;  %s4753_s19 = smov [#allocation5]  }
 0x15a   : > { %p4628_p0 = scmp.ne.s32.totalorder %s596_s8, %s4627_s6  ;;  %s4632_s17 = sshll.u32 %s4753_s19, 4  ;;  %s4633_s17 = int_to_ptr.vmem [resolvable:$false] %s4632_s17 }
 0x15b   : > { %s4634_s20 = scalar_lea.vmem %s4633_s17, 256  ;;  %p4635_p10 = scmp.lt.s32.totalorder %s596_s8, %s4633_s17 }
 0x15c   : > { %p4630_p2 = pnand %p4628_p0, %p4584_p8  ;;  %p4636_p6 = scmp.lt.s32.totalorder %s4634_s20, %s4627_s6 }
 0x15e   : > { %p4631_p4 = pneg %p4630_p2  ;;  %p4637_p5 = por %p4636_p6, %p4635_p10 }
 0x160   : > { %p4638_p7 = pnand %p4637_p5, %p4631_p4 }
 0x162   : > { %4641 = shalt.err (!%p4638_p7)
}
 0x163   : > { %4206 = dma.hbm_to_vmem [thread:$0]  (!%p5160_p11), %s5167_s15, 128, %s596_s8, %s585_s30  }
 0x164   : > { %s5731_s26 = sld [smem:[#allocation32_spill]] }
 0x16a   : > { %p5732_p3 = scmp.ne.s32.totalorder %s5731_s26, 0 }
 0x16b   : > { %s5220_s7 = sand.u32 (!%p5732_p3), 1, %s4728_s22   ;;  %p5733_p6 = scmp.ne.s32.totalorder (!%p5732_p3), %s5725_s5, 0 }
 0x16c   : > { %604 = sbr.rel (%p5732_p3) target bundleno = 2788 (0xae4), region = 84  ;;  %s5223_s14 = sshll.u32 (!%p5732_p3), %s5220_s7, 3 }
 0x16d   : > { %s607_s16 = scalar_lea.sflag (!%p5732_p3), [#allocation3], %s5220_s7  ;;  %s610_s18 = scalar_lea.vmem (!%p5732_p3), [#allocation2], %s5223_s14 }
 0x173   : > { %4687 = dma.done.wait (%p5733_p6), %s607_s16, 128  }
 0x174   : > { %4689 = vsyncadd (%p5733_p6), %s607_s16, 4294967168  ;;  %s615_s29 = sand.u32 1, %s4864_s27   ;;  %s619_s8 = scalar_lea.vmem [#allocation5], %s5223_s14 }
 0x175   : > { %s616_s15 = scalar_lea.sflag [#allocation6], %s615_s29 }
 0x176   : > { %4691 = dma.done.wait (%p5733_p6), %s616_s15, 128  }
 0x177   : > { %4693 = vsyncadd (%p5733_p6), %s616_s15, 4294967168  ;;  %p5734_p11 = scmp.eq.s32.totalorder %s4864_s27, 0 }
 0x179   : > { %4695 = dma.done.wait (%p5734_p11), [#allocation6], 256   ;;  %p5735_p8 = pmov %p5734_p11 }
 0x17b   : > { %4697 = vsyncadd (%p5735_p8), [#allocation6], 4294967040  ;;  %p5736_p9 = pmov %p5735_p8 }
 0x17c   : > { %p5737_p12 = pmov %p5735_p8 }
 0x17d   : > { %4699 = dma.done.wait (%p5736_p9), [#allocation9], 32  }
 0x17e   : > { %4701 = vsyncadd (%p5737_p12), [#allocation9], 4294967264  ;;  %p5738_p1 = pmov %p5735_p8 }
 0x180   : > { %4703 = dma.done.wait (%p5738_p1), [#allocation12], 384   ;;  %p5739_p13 = pmov %p5738_p1 }
 0x181   : > { %p5740_p0 = pmov %p5738_p1 }
 0x182   : > { %4705 = vsyncadd (%p5739_p13), [#allocation12], 4294966912 }
 0x183   : > { %4707 = dma.done.wait (%p5740_p0), [#allocation15], 128   ;;  %p5741_p2 = pmov %p5740_p0 }
 0x184   : > { %p5742_p4 = pmov %p5740_p0 }
 0x185   : > { %4709 = vsyncadd (%p5741_p2), [#allocation15], 4294967168 }
 0x186   : > { %4711 = dma.done.wait (%p5742_p4), [#allocation18], 320   ;;  %p5743_p10 = pmov %p5740_p0 }
 0x187   : > { %p5744_p5 = pmov %p5740_p0 }
 0x188   : > { %4713 = vsyncadd (%p5743_p10), [#allocation18], 4294966976 }
 0x189   : > { %4715 = dma.done.wait (%p5744_p5), [#allocation21], 16   ;;  %p5745_p7 = pmov %p5740_p0 }
 0x18a   : > { %vm716_vm0 = vcmask 261120   ;;  %v714_v0 = vld [vmem:[%s610_s18] sm:$0xff]  ;;  %s5746_s25 = sld [smem:[#allocation38_spill]]  ;;  %v4754_v9 = vmov 0.0   ;;  %vm4755_vm1 = vmmov 0   ;;  %v715_v38 = vld [vmem:[%s619_s8] sm:$0xff] }
 0x18b   : > { %4717 = vsyncadd (%p5745_p7), [#allocation21], 4294967280  ;;  %v717_v1 = vsel %vm716_vm0, %v714_v0, 0.0  ;;  %3875 = vmatprep.subr.bf16.mxu0 %v4754_v9  ;;  %3881 = vmatprep.subr.bf16.mxu1 %v4754_v9  ;;  %v3710_v16 = vld [vmem:[#allocation8] ss:$0 sm:$0xff]  ;;  %v748_v41 = vpack.c.bf16 %v715_v38, %v715_v38  ;;  %vm1447_vm2 = vcmask 64512  }
 0x18c   : > { %718 = vadd.xlane.f32.xlu0 %v717_v1  ;;  %3877 = vmatprep.mubr.msk.bf16.mxu0 %vm4755_vm1, %v4754_v9  ;;  %v3711_v18 = vld [vmem:[#allocation10] ss:$0 sm:$0xff]  ;;  %v1160_v34 = vld [vmem:[#allocation13] sm:$0xf]  ;;  %v1161_v35 = vld [vmem:[#allocation13 + $0x4] sm:$0xf] }
 0x18d   : > { %3883 = vmatprep.mubr.msk.bf16.mxu1 %vm4755_vm1, %v4754_v9  ;;  %v1196_v36 = vsel %vm716_vm0, %v1160_v34, 0  ;;  %v1239_v37 = vsel %vm716_vm0, %v1161_v35, 0  ;;  %v1162_v39 = vld [vmem:[#allocation13 + $0x8] sm:$0xf]  ;;  %v1163_v40 = vld [vmem:[#allocation13 + $0xc] sm:$0xf] }
 0x18e   : > { %v1282_v42 = vsel %vm716_vm0, %v1162_v39, 0  ;;  %v1325_v43 = vsel %vm716_vm0, %v1163_v40, 0  ;;  %v1443_v44 = vld [vmem:[#allocation7] sm:$0xf]  ;;  %v1444_v45 = vld [vmem:[#allocation7 + $0x4] sm:$0xf] }
 0x18f   : > { %v1452_v46 = vsel %vm1447_vm2, %v1443_v44, 0  ;;  %v1498_v47 = vsel %vm1447_vm2, %v1444_v45, 0  ;;  %v3712_v48 = vld [vmem:[#allocation11] ss:$0 sm:$0xff]  ;;  %v3713_v49 = vld [vmem:[#allocation11 + $0x1] ss:$0 sm:$0xff] }
 0x190   : > { %v749_v7 = vld [vmem:[%s5746_s25] sm:$0xf]  ;;  %v750_v8 = vld [vmem:[%s5746_s25 + $0x4] sm:$0xf]  ;;  %v751_v20 = vld [vmem:[%s5746_s25 + $0x8] sm:$0xf] }
 0x191   : > { %v817_v10 = vsel %vm716_vm0, %v749_v7, 0  ;;  %v860_v11 = vsel %vm716_vm0, %v750_v8, 0  ;;  %v752_v21 = vld [vmem:[%s5746_s25 + $0xc] sm:$0xf]  ;;  %v903_v24 = vsel %vm716_vm0, %v751_v20, 0  ;;  %s5747_s6 = sld [smem:[#allocation44_spill]] }
 0x192   : > { %3876 = vmatpush3.bf16.xpose.msra.mxu0 %v817_v10  ;;  %3882 = vmatpush3.bf16.xpose.msra.mxu1 %v860_v11  ;;  %v946_v25 = vsel %vm716_vm0, %v752_v21, 0  ;;  %v753_v26 = vld [vmem:[%s5746_s25 + $0x10] sm:$0xf]  ;;  %v754_v27 = vld [vmem:[%s5746_s25 + $0x14] sm:$0xf]  ;;  %s5748_s20 = sld [smem:[#allocation43_spill]] }
 0x193   : > { %3887 = vmatprep.subr.bf16.mxu0 %v4754_v9  ;;  %3893 = vmatprep.subr.bf16.mxu1 %v4754_v9  ;;  %v989_v28 = vsel %vm716_vm0, %v753_v26, 0  ;;  %v1032_v29 = vsel %vm716_vm0, %v754_v27, 0  ;;  %v755_v30 = vld [vmem:[%s5746_s25 + $0x18] sm:$0xf]  ;;  %v756_v31 = vld [vmem:[%s5746_s25 + $0x1c] sm:$0xf] }
 0x194   : > { %v1075_v32 = vsel %vm716_vm0, %v755_v30, 0  ;;  %v1118_v33 = vsel %vm716_vm0, %v756_v31, 0  ;;  %v3740_v51 = vld [vmem:[#allocation17] ss:$0 sm:$0xff]  ;;  %v3741_v53 = vld [vmem:[#allocation17 + $0x1] ss:$0 sm:$0xff] }
 0x195   : > { %v1445_v60 = vld [vmem:[#allocation7 + $0x8] sm:$0xf]  ;;  %v1446_v61 = vld [vmem:[#allocation7 + $0xc] sm:$0xf]  ;;  %v3715_v7 = vld [vmem:[#allocation11 + $0x3] ss:$0 sm:$0xff] }
 0x196   : > { %v3742_v10 = vld [vmem:[#allocation17 + $0x2] ss:$0 sm:$0xff]  ;;  %vm3087_vm9 = vcmask 1043456   ;;  %s5749_s26 = sld [smem:[#allocation45_spill]]  ;;  %s3784_s29 = sshll.u32 %s4864_s27, 7 }
 0x197   : > { %s712_s15 = scalar_lea.vmem [#allocation22], %s5223_s14  ;;  %s5750_s8 = sld [smem:[#allocation46_spill]] }
 0x198   : > { %s3491_s5 = sshll.u32 %s712_s15, 4  ;;  %s3478_s19 = scalar_lea.sflag [#allocation4], %s5220_s7  ;;  %s5618_s5 = int_to_ptr.vmem [resolvable:$true] %s3491_s5 }
 0x199   : > { %s4642_s27 = scalar_lea.vmem %s5618_s5, 128  ;;  %p5751_p6 = scmp.ne.s32.totalorder %s5726_s13, 0 }
 0x19a   : > { %p4643_p3 = scmp.ne.s32.totalorder %s5618_s5, %s4642_s27  ;;  %s4757_s14 = smov [#allocation22]  }
 0x19b   : > { %s4646_s17 = sshll.u32 %s4757_s14, 4  ;;  %s4647_s17 = int_to_ptr.vmem [resolvable:$false] %s4646_s17 }
 0x19c   : > { %p4644_p11 = pnand %p4643_p3, %p5751_p6  ;;  %s4648_s16 = scalar_lea.vmem %s4647_s17, 256 }
 0x19d   : > { %s5616_s9 = scalar_lea.hbm %s5750_s8, %s3784_s29  ;;  %p4649_p9 = scmp.lt.s32.totalorder %s5618_s5, %s4647_s17 }
 0x19e   : > { %p4645_p8 = pneg %p4644_p11  ;;  %p4650_p12 = scmp.lt.s32.totalorder %s4648_s16, %s4642_s27 }
 0x1a0   : > { %p4651_p1 = por %p4650_p12, %p4649_p9 }
 0x1a2   : > { %p4652_p13 = pnand %p4651_p1, %p4645_p8 }
 0x219   : > { %v719_v2 = vpop.xlane.xlu0 %718 }
 0x21a   : > { %v721_v3 = vmul.f32 0.03125, %v719_v2 }
 0x21c   : > { %v722_v4 = vsub.f32 %v714_v0, %v721_v3 }
 0x21e   : > { %v723_v5 = vmul.f32 %v722_v4, %v722_v4 }
 0x220   : > { %v724_v6 = vsel %vm716_vm0, %v723_v5, 0.0  ;;  %v1590_v5 = vsel %vm1447_vm2, %v1446_v61, 0  ;;  %v3757_v61 = vld [vmem:[%s5748_s20 + $0x8] sm:$0xff] }
 0x221   : > { %725 = vadd.xlane.f32.xlu0 %v724_v6  ;;  %v3714_v6 = vld [vmem:[#allocation11 + $0x2] ss:$0 sm:$0xff]  ;;  %vm2232_vm4 = vcmp.ne.f32.partialorder %v3757_v61, 0.0 }
 0x2ae   : > { %v726_v12 = vpop.xlane.xlu0 %725 }
 0x2af   : > { %v727_v13 = vmul.f32 0.03125, %v726_v12  ;;  %v3743_v12 = vld [vmem:[#allocation17 + $0x3] ss:$0 sm:$0xff] }
 0x2b1   : > { %v728_v14 = vadd.f32 1e-05, %v727_v13 }
 0x2b3   : > { %4284 = vrsqrt.f32 %v728_v14 }
 0x2bd   : > { %v4285_v15 = vpop.eup %4284 }
 0x2be   : > { %v730_v17 = vmul.f32 %v4285_v15, %v722_v4  ;;  %v1544_v4 = vsel %vm1447_vm2, %v1445_v60, 0  ;;  %v1925_v60 = vld [vmem:[%s5748_s20] sm:$0xff] }
 0x2bf   : > { %vm1926_vm3 = vcmp.ne.f32.partialorder %v1925_v60, 0.0 }
 0x2c0   : > { %v738_v19 = vmul.f32 %v3710_v16, %v730_v17 }
 0x2c2   : > { %v746_v22 = vadd.f32 %v3711_v18, %v738_v19 }
 0x2c4   : > { %v747_v23 = vpack.c.bf16 %v746_v22, %v746_v22 }
 0x2c6   : > { %3878 = vmatmul.mubr.msk.bf16.vlgmr.msra.gmra.mrb[0].mxu0 %vm716_vm0, %v747_v23  ;;  %3884 = vmatmul.mubr.msk.bf16.vlgmr.msra.gmra.mrb[0].mxu1 %vm716_vm0, %v747_v23 }
 0x2c7   : > { %3888 = vmatpush3.bf16.xpose.msra.mxu0 %v903_v24  ;;  %3894 = vmatpush3.bf16.xpose.msra.mxu1 %v946_v25  ;;  %v5384_v25 = vld [vmem:[%s5747_s6] sm:$0xff] }
 0x2c8   : > { %3889 = vmatprep.mubr.msk.bf16.mxu0 %vm4755_vm1, %v4754_v9  ;;  %3895 = vmatprep.mubr.msk.bf16.mxu1 %vm4755_vm1, %v4754_v9 }
 0x2c9   : > { %3899 = vmatprep.subr.bf16.mxu0 %v4754_v9  ;;  %3905 = vmatprep.subr.bf16.mxu1 %v4754_v9 }
 0x2ce   : > { %3890 = vmatmul.mubr.msk.bf16.vlgmr.msra.gmra.mrb[4].mxu0 %vm716_vm0, %v747_v23  ;;  %3896 = vmatmul.mubr.msk.bf16.vlgmr.msra.gmra.mrb[4].mxu1 %vm716_vm0, %v747_v23 }
 0x2cf   : > { %3900 = vmatpush3.bf16.xpose.msra.mxu0 %v989_v28  ;;  %3906 = vmatpush3.bf16.xpose.msra.mxu1 %v1032_v29 }
 0x2d0   : > { %3901 = vmatprep.mubr.msk.bf16.mxu0 %vm4755_vm1, %v4754_v9  ;;  %3907 = vmatprep.mubr.msk.bf16.mxu1 %vm4755_vm1, %v4754_v9 }
 0x2d1   : > { %3911 = vmatprep.subr.bf16.mxu0 %v4754_v9  ;;  %3917 = vmatprep.subr.bf16.mxu1 %v4754_v9 }
 0x2d6   : > { %3902 = vmatmul.mubr.msk.bf16.vlgmr.msra.gmra.mrb[8].mxu0 %vm716_vm0, %v747_v23  ;;  %3908 = vmatmul.mubr.msk.bf16.vlgmr.msra.gmra.mrb[8].mxu1 %vm716_vm0, %v747_v23 }
 0x2d7   : > { %3912 = vmatpush3.bf16.xpose.msra.mxu0 %v1075_v32  ;;  %3918 = vmatpush3.bf16.xpose.msra.mxu1 %v1118_v33 }
 0x2d8   : > { %3913 = vmatprep.mubr.msk.bf16.mxu0 %vm4755_vm1, %v4754_v9  ;;  %3919 = vmatprep.mubr.msk.bf16.mxu1 %vm4755_vm1, %v4754_v9 }
 0x2d9   : > { %3923 = vmatprep.subr.bf16.mxu0 %v4754_v9  ;;  %3929 = vmatprep.subr.bf16.mxu1 %v4754_v9 }
 0x2de   : > { %3914 = vmatmul.mubr.msk.bf16.vlgmr.msra.gmra.mrb[12].mxu0 %vm716_vm0, %v747_v23  ;;  %3920 = vmatmul.mubr.msk.bf16.vlgmr.msra.gmra.mrb[12].mxu1 %vm716_vm0, %v747_v23 }
 0x2df   : > { %3924 = vmatpush3.bf16.xpose.msra.mxu0 %v1196_v36  ;;  %3930 = vmatpush3.bf16.xpose.msra.mxu1 %v1239_v37 }
 0x2e0   : > { %3925 = vmatprep.mubr.msk.bf16.mxu0 %vm4755_vm1, %v4754_v9  ;;  %3935 = vmatprep.subr.bf16.mxu0 %v4754_v9 }
 0x2e1   : > { %3931 = vmatprep.mubr.msk.bf16.mxu1 %vm4755_vm1, %v4754_v9  ;;  %3941 = vmatprep.subr.bf16.mxu1 %v4754_v9 }
 0x2e6   : > { %3926 = vmatmul.mubr.msk.bf16.vlgmr.msra.gmra.mrb[16].mxu0 %vm716_vm0, %v748_v41  ;;  %3932 = vmatmul.mubr.msk.bf16.vlgmr.msra.gmra.mrb[16].mxu1 %vm716_vm0, %v748_v41 }
 0x2e7   : > { %3936 = vmatpush3.bf16.xpose.msra.mxu0 %v1282_v42  ;;  %3942 = vmatpush3.bf16.xpose.msra.mxu1 %v1325_v43 }
 0x2e8   : > { %3937 = vmatprep.mubr.msk.bf16.mxu0 %vm4755_vm1, %v4754_v9  ;;  %3943 = vmatprep.mubr.msk.bf16.mxu1 %vm4755_vm1, %v4754_v9 }
 0x2e9   : > { %3947 = vmatprep.subr.bf16.mxu0 %v4754_v9  ;;  %3953 = vmatprep.subr.bf16.mxu1 %v4754_v9 }
 0x2ee   : > { %3938 = vmatmul.mubr.msk.bf16.vlgmr.msra.gmra.mrb[20].mxu0 %vm716_vm0, %v748_v41  ;;  %3944 = vmatmul.mubr.msk.bf16.vlgmr.msra.gmra.mrb[20].mxu1 %vm716_vm0, %v748_v41 }
 0x2ef   : > { %3949 = vmatprep.mubr.msk.bf16.mxu0 %vm4755_vm1, %v4754_v9  ;;  %3955 = vmatprep.mubr.msk.bf16.mxu1 %vm4755_vm1, %v4754_v9 }
 0x2f0   : > { %3948 = vmatpush3.bf16.xpose.msra.mxu0 %v1452_v46  ;;  %3954 = vmatpush3.bf16.xpose.msra.mxu1 %v1498_v47 }
 0x2f1   : > { %3959 = vmatprep.subr.bf16.mxu0 %v4754_v9  ;;  %3965 = vmatprep.subr.bf16.mxu1 %v4754_v9 }
 0x399   : > { %v853_v50 = vpop.f32.mrb[0].mxu0  ;;  %v896_v52 = vpop.f32.mrb[0].mxu1 }
 0x39a   : > { %v5359_v54 = vadd.f32 %v3712_v48, %v853_v50  ;;  %v5361_v55 = vadd.f32 %v3713_v49, %v896_v52  ;;  %v3879_v56 = vpop.f32.mrb[1].mxu0  ;;  %v3885_v57 = vpop.f32.mrb[1].mxu1 }
 0x39b   : > { %v856_v58 = vpop.f32.mrb[2].mxu0  ;;  %v899_v59 = vpop.f32.mrb[2].mxu1 }
 0x39c   : > { %v1431_v62 = vadd.f32 %v3740_v51, %v5359_v54  ;;  %v1432_v63 = vadd.f32 %v3741_v53, %v5361_v55  ;;  %v3880_v0 = vpop.f32.mrb[3].mxu0  ;;  %v3886_v1 = vpop.f32.mrb[3].mxu1 }
 0x39e   : > { %v1435_v2 = vpack.c.bf16 %v1431_v62, %v1431_v62  ;;  %v1436_v3 = vpack.c.bf16 %v1432_v63, %v1432_v63  ;;  %v4756_v62 = vmov 0  }
 0x39f   : > { %4282 = vset.pattern.permute.xlu1 %v4756_v62  ;;  %4283 = vset.pattern.permute.xlu0 %v4756_v62  ;;  %v1927_v63 = vsel %vm1926_vm3, 1, %v4756_v62  ;;  %v2233_v0 = vsel %vm2232_vm4, 1, %v4756_v62 }
 0x3a0   : > { %3950 = vmatmul.mubr.msk.bf16.vlgmr.msra.gmra.mrb[24].mxu0 %vm1447_vm2, %v1435_v2  ;;  %3956 = vmatmul.mubr.msk.bf16.vlgmr.msra.gmra.mrb[24].mxu1 %vm1447_vm2, %v1436_v3 }
 0x3a1   : > { %v939_v8 = vpop.f32.mrb[4].mxu0  ;;  %v982_v11 = vpop.f32.mrb[4].mxu1  ;;  %3960 = vmatpush3.bf16.xpose.msra.mxu0 %v1544_v4  ;;  %3966 = vmatpush3.bf16.xpose.msra.mxu1 %v1590_v5 }
 0x3a2   : > { %v5369_v13 = vadd.f32 %v3714_v6, %v939_v8  ;;  %v5371_v14 = vadd.f32 %v3715_v7, %v982_v11  ;;  %v3891_v15 = vpop.f32.mrb[5].mxu0  ;;  %v3897_v16 = vpop.f32.mrb[5].mxu1  ;;  %3961 = vmatprep.mubr.msk.bf16.mxu0 %vm4755_vm1, %v4754_v9  ;;  %3967 = vmatprep.mubr.msk.bf16.mxu1 %vm4755_vm1, %v4754_v9 }
 0x3a3   : > { %v942_v17 = vpop.f32.mrb[6].mxu0  ;;  %v985_v18 = vpop.f32.mrb[6].mxu1  ;;  %3971 = vmatprep.subr.mxu0 %v4754_v9  ;;  %3976 = vmatprep.subr.mxu1 %v4754_v9 }
 0x3a4   : > { %v1433_v19 = vadd.f32 %v3742_v10, %v5369_v13  ;;  %v1434_v20 = vadd.f32 %v3743_v12, %v5371_v14  ;;  %v3892_v21 = vpop.f32.mrb[7].mxu0  ;;  %v3898_v22 = vpop.f32.mrb[7].mxu1  ;;  %1929 = vperm.xlu1 %4282, %v1927_v63   ;;  %v3764_v63 = vld [vmem:[%s5747_s6 + $0x18] sm:$0xff] }
 0x3a6   : > { %v1437_v23 = vpack.c.bf16 %v1433_v19, %v1433_v19  ;;  %v1438_v24 = vpack.c.bf16 %v1434_v20, %v1434_v20  ;;  %v3752_v20 = vld [vmem:[%s5747_s6 + $0x8] sm:$0xff] }
 0x3a8   : > { %3962 = vmatmul.mubr.msk.bf16.vlgmr.msra.gmra.mrb[28].mxu0 %vm1447_vm2, %v1437_v23  ;;  %3968 = vmatmul.mubr.msk.bf16.vlgmr.msra.gmra.mrb[28].mxu1 %vm1447_vm2, %v1438_v24 }
 0x3a9   : > { %v5388_v26 = vpop.f32.mrb[8].mxu0  ;;  %v5390_v27 = vpop.f32.mrb[8].mxu1  ;;  %3972 = vmatpush3.msra.mxu0 %v5384_v25  ;;  %3973 = vmatprep.mubr.msk.f32.mxu0 %vm4755_vm1, %v4754_v9 }
 0x3aa   : > { %v3903_v28 = vpop.f32.mrb[9].mxu0  ;;  %v3909_v29 = vpop.f32.mrb[9].mxu1  ;;  %3977 = vmatpush3.msra.mxu1 %v5384_v25  ;;  %3978 = vmatprep.mubr.msk.f32.mxu1 %vm4755_vm1, %v4754_v9 }
 0x3ab   : > { %v1028_v30 = vpop.f32.mrb[10].mxu0  ;;  %v1071_v31 = vpop.f32.mrb[10].mxu1  ;;  %3981 = vmatprep.subr.mxu0 %v4754_v9  ;;  %3986 = vmatprep.subr.mxu1 %v4754_v9 }
 0x3ac   : > { %v3904_v32 = vpop.f32.mrb[11].mxu0  ;;  %v3910_v33 = vpop.f32.mrb[11].mxu1  ;;  %2235 = vperm.xlu1 %4282, %v2233_v0  }
 0x3b1   : > { %v5400_v34 = vpop.f32.mrb[12].mxu0  ;;  %v5402_v35 = vpop.f32.mrb[12].mxu1 }
 0x3b2   : > { %v3915_v36 = vpop.f32.mrb[13].mxu0  ;;  %v3921_v37 = vpop.f32.mrb[13].mxu1 }
 0x3b3   : > { %v1114_v38 = vpop.f32.mrb[14].mxu0  ;;  %v1157_v39 = vpop.f32.mrb[14].mxu1 }
 0x3b4   : > { %v3916_v40 = vpop.f32.mrb[15].mxu0  ;;  %v3922_v41 = vpop.f32.mrb[15].mxu1  ;;  %v3758_v38 = vld [vmem:[%s5747_s6 + $0x10] sm:$0xff] }
 0x3b5   : > { %v3763_v39 = vld [vmem:[%s5748_s20 + $0x10] sm:$0xff] }
 0x3b6   : > { %vm2538_vm6 = vcmp.ne.f32.partialorder %v3763_v39, 0.0 }
 0x3b7   : > { %v2539_v40 = vsel %vm2538_vm6, 1, %v4756_v62 }
 0x3b8   : > { %2541 = vperm.xlu0 %4283, %v2539_v40  }
 0x3b9   : > { %v5404_v42 = vpop.f32.mrb[16].mxu0  ;;  %v5406_v43 = vpop.f32.mrb[16].mxu1 }
 0x3ba   : > { %v3927_v44 = vpop.f32.mrb[17].mxu0  ;;  %v3933_v45 = vpop.f32.mrb[17].mxu1 }
 0x3bb   : > { %v1235_v46 = vpop.f32.mrb[18].mxu0  ;;  %v1278_v47 = vpop.f32.mrb[18].mxu1 }
 0x3bc   : > { %v3928_v48 = vpop.f32.mrb[19].mxu0  ;;  %v3934_v49 = vpop.f32.mrb[19].mxu1 }
 0x3c1   : > { %v5408_v50 = vpop.f32.mrb[20].mxu0  ;;  %v5410_v51 = vpop.f32.mrb[20].mxu1 }
 0x3c2   : > { %v3939_v52 = vpop.f32.mrb[21].mxu0  ;;  %v3945_v53 = vpop.f32.mrb[21].mxu1 }
 0x3c3   : > { %v1321_v56 = vpop.f32.mrb[22].mxu0  ;;  %v1364_v57 = vpop.f32.mrb[22].mxu1 }
 0x3c4   : > { %v3940_v58 = vpop.f32.mrb[23].mxu0  ;;  %v3946_v59 = vpop.f32.mrb[23].mxu1 }
 0x423   : > { %v1930_v21 = vpop.permute.xlu1 %1929 }
 0x424   : > { %vm1931_vm5 = vcmp.eq.s32.totalorder %v1930_v21, 1 }
 0x42b   : > { %v2236_v41 = vpop.permute.xlu1 %2235 }
 0x42c   : > { %vm2237_vm7 = vcmp.eq.s32.totalorder %v2236_v41, 1 }
 0x437   : > { %v2542_v60 = vpop.permute.xlu0 %2541 }
 0x438   : > { %vm2543_vm8 = vcmp.eq.s32.totalorder %v2542_v60, 1 }
 0x473   : > { %v1488_v1 = vpop.f32.mrb[24].mxu0  ;;  %v1534_v2 = vpop.f32.mrb[24].mxu1 }
 0x474   : > { %v3951_v3 = vpop.f32.mrb[25].mxu0  ;;  %v3957_v4 = vpop.f32.mrb[25].mxu1  ;;  %3974 = vmatmul.mubr.msk.f32.vlgmr.msra.gmra.mrb[32].mxu0 %vm1447_vm2, %v1488_v1  ;;  %3979 = vmatmul.mubr.msk.f32.vlgmr.msra.gmra.mrb[32].mxu1 %vm1447_vm2, %v1534_v2 }
 0x475   : > { %v1491_v5 = vpop.f32.mrb[26].mxu0  ;;  %v1537_v6 = vpop.f32.mrb[26].mxu1  ;;  %3982 = vmatpush3.msra.mxu0 %v5384_v25  ;;  %3983 = vmatprep.mubr.msk.f32.mxu0 %vm4755_vm1, %v4754_v9  ;;  %v3716_v4 = vld [vmem:[#allocation11 + $0x4] ss:$0 sm:$0xff] }
 0x476   : > { %v3952_v7 = vpop.f32.mrb[27].mxu0  ;;  %v3958_v8 = vpop.f32.mrb[27].mxu1  ;;  %3987 = vmatpush3.msra.mxu1 %v5384_v25  ;;  %3988 = vmatprep.mubr.msk.f32.mxu1 %vm4755_vm1, %v4754_v9  ;;  %v3717_v5 = vld [vmem:[#allocation11 + $0x5] ss:$0 sm:$0xff]  ;;  %v1026_v6 = vadd.f32 %v3716_v4, %v5388_v26 }
 0x477   : > { %3991 = vmatprep.subr.mxu0 %v4754_v9  ;;  %3996 = vmatprep.subr.mxu1 %v4754_v9  ;;  %v1069_v7 = vadd.f32 %v3717_v5, %v5390_v27 }
 0x478   : > { %v1439_v26 = vpack.c.bf16 %v1026_v6, %v1026_v6 }
 0x479   : > { %v1440_v27 = vpack.c.bf16 %v1069_v7, %v1069_v7 }
 0x47a   : > { %v2852_v21 = vsel %vm1447_vm2, %v1439_v26, 0 }
 0x47b   : > { %v1580_v10 = vpop.f32.mrb[28].mxu0  ;;  %v1626_v11 = vpop.f32.mrb[28].mxu1 }
 0x47c   : > { %v3963_v12 = vpop.f32.mrb[29].mxu0  ;;  %v3969_v15 = vpop.f32.mrb[29].mxu1  ;;  %3984 = vmatmul.mubr.msk.f32.vlgmr.msra.gmra.mrb[34].mxu0 %vm1447_vm2, %v1580_v10  ;;  %3989 = vmatmul.mubr.msk.f32.vlgmr.msra.gmra.mrb[34].mxu1 %vm1447_vm2, %v1626_v11 }
 0x47d   : > { %v1583_v16 = vpop.f32.mrb[30].mxu0  ;;  %v1629_v17 = vpop.f32.mrb[30].mxu1  ;;  %3993 = vmatprep.mubr.msk.f32.mxu0 %vm4755_vm1, %v4754_v9  ;;  %3998 = vmatprep.mubr.msk.f32.mxu1 %vm4755_vm1, %v4754_v9 }
 0x47e   : > { %v3964_v18 = vpop.f32.mrb[31].mxu0  ;;  %v3970_v19 = vpop.f32.mrb[31].mxu1  ;;  %3992 = vmatpush3.msra.mxu0 %v3752_v20  ;;  %3997 = vmatpush3.msra.mxu1 %v3752_v20  ;;  %v3718_v17 = vld [vmem:[#allocation11 + $0x6] ss:$0 sm:$0xff] }
 0x47f   : > { %4001 = vmatprep.subr.mxu0 %v4754_v9  ;;  %4006 = vmatprep.subr.mxu1 %v4754_v9  ;;  %v3719_v18 = vld [vmem:[#allocation11 + $0x7] ss:$0 sm:$0xff]  ;;  %v3736_v19 = vld [vmem:[#allocation16] ss:$0 sm:$0xff] }
 0x547   : > { %v1702_v22 = vpop.f32.mrb[32].mxu0  ;;  %v1775_v23 = vpop.f32.mrb[32].mxu1 }
 0x548   : > { %v1932_v24 = vsel %vm1931_vm5, %v1702_v22, %v1488_v1  ;;  %v1933_v25 = vsel %vm1931_vm5, %v1775_v23, %v1534_v2  ;;  %v3975_v28 = vpop.f32.mrb[33].mxu0  ;;  %v3980_v29 = vpop.f32.mrb[33].mxu1  ;;  %v2898_v22 = vsel %vm1447_vm2, %v1440_v27, 0  ;;  %v1112_v23 = vadd.f32 %v3718_v17, %v5400_v34  ;;  %v3739_v34 = vld [vmem:[#allocation16 + $0x3] ss:$0 sm:$0xff] }
 0x549   : > { %3994 = vmatmul.mubr.msk.f32.vlgmr.msra.gmra.mrb[36].mxu0 %vm1447_vm2, %v1932_v24  ;;  %3999 = vmatmul.mubr.msk.f32.vlgmr.msra.gmra.mrb[36].mxu1 %vm1447_vm2, %v1933_v25  ;;  %v1398_v40 = vadd.f32 %v3739_v34, %v5371_v14  ;;  %v2833_v14 = vld [vmem:[%s5749_s26] sm:$0xff] }
 0x54a   : > { %4002 = vmatpush3.msra.mxu0 %v3752_v20  ;;  %4003 = vmatprep.mubr.msk.f32.mxu0 %vm4755_vm1, %v4754_v9  ;;  %v1441_v29 = vpack.c.bf16 %v1112_v23, %v1112_v23 }
 0x54b   : > { %4007 = vmatpush3.msra.mxu1 %v3752_v20  ;;  %4008 = vmatprep.mubr.msk.f32.mxu1 %vm4755_vm1, %v4754_v9  ;;  %v3737_v20 = vld [vmem:[#allocation16 + $0x1] ss:$0 sm:$0xff] }
 0x54c   : > { %4011 = vmatprep.subr.mxu0 %v4754_v9  ;;  %4016 = vmatprep.subr.mxu1 %v4754_v9  ;;  %v1396_v28 = vadd.f32 %v3737_v20, %v5361_v55 }
 0x54f   : > { %v1848_v30 = vpop.f32.mrb[34].mxu0  ;;  %v1921_v31 = vpop.f32.mrb[34].mxu1 }
 0x550   : > { %v1934_v32 = vsel %vm1931_vm5, %v1848_v30, %v1580_v10  ;;  %v1935_v33 = vsel %vm1931_vm5, %v1921_v31, %v1626_v11  ;;  %v3985_v36 = vpop.f32.mrb[35].mxu0  ;;  %v3990_v37 = vpop.f32.mrb[35].mxu1  ;;  %v3728_v31 = vld [vmem:[#allocation14] ss:$0 sm:$0xff] }
 0x551   : > { %4004 = vmatmul.mubr.msk.f32.vlgmr.msra.gmra.mrb[38].mxu0 %vm1447_vm2, %v1934_v32  ;;  %4009 = vmatmul.mubr.msk.f32.vlgmr.msra.gmra.mrb[38].mxu1 %vm1447_vm2, %v1935_v33  ;;  %v1400_v36 = vpack.c.bf16 %v1396_v28, %v1396_v28  ;;  %v3738_v37 = vld [vmem:[#allocation16 + $0x2] ss:$0 sm:$0xff] }
 0x552   : > { %4013 = vmatprep.mubr.msk.f32.mxu0 %vm4755_vm1, %v4754_v9  ;;  %4018 = vmatprep.mubr.msk.f32.mxu1 %vm4755_vm1, %v4754_v9  ;;  %v1397_v39 = vadd.f32 %v3738_v37, %v5369_v13 }
 0x553   : > { %4012 = vmatpush3.msra.mxu0 %v3758_v38  ;;  %4017 = vmatpush3.msra.mxu1 %v3758_v38 }
 0x554   : > { %4021 = vmatprep.subr.mxu0 %v4754_v9  ;;  %4026 = vmatprep.subr.mxu1 %v4754_v9  ;;  %v1401_v41 = vpack.c.bf16 %v1397_v39, %v1397_v39 }
 0x61c   : > { %v2007_v44 = vpop.f32.mrb[36].mxu0  ;;  %v2080_v45 = vpop.f32.mrb[36].mxu1 }
 0x61d   : > { %v2238_v46 = vsel %vm2237_vm7, %v2007_v44, %v1932_v24  ;;  %v2239_v47 = vsel %vm2237_vm7, %v2080_v45, %v1933_v25  ;;  %v3995_v48 = vpop.f32.mrb[37].mxu0  ;;  %v4000_v49 = vpop.f32.mrb[37].mxu1  ;;  %v1155_v24 = vadd.f32 %v3719_v18, %v5402_v35  ;;  %v1395_v25 = vadd.f32 %v3736_v19, %v5359_v54 }
 0x61e   : > { %4014 = vmatmul.mubr.msk.f32.vlgmr.msra.gmra.mrb[40].mxu0 %vm1447_vm2, %v2238_v46  ;;  %4019 = vmatmul.mubr.msk.f32.vlgmr.msra.gmra.mrb[40].mxu1 %vm1447_vm2, %v2239_v47  ;;  %v2944_v35 = vsel %vm1447_vm2, %v1441_v29, 0  ;;  %v1233_v54 = vadd.f32 %v3728_v31, %v5404_v42  ;;  %v1402_v44 = vpack.c.bf16 %v1398_v40, %v1398_v40 }
 0x61f   : > { %4022 = vmatpush3.msra.mxu0 %v3758_v38  ;;  %4023 = vmatprep.mubr.msk.f32.mxu0 %vm4755_vm1, %v4754_v9  ;;  %v1442_v30 = vpack.c.bf16 %v1155_v24, %v1155_v24 }
 0x620   : > { %4027 = vmatpush3.msra.mxu1 %v3758_v38  ;;  %4028 = vmatprep.mubr.msk.f32.mxu1 %vm4755_vm1, %v4754_v9  ;;  %v3080_v42 = vpack.c.bf16 %v1233_v54, %v1233_v54 }
 0x621   : > { %4031 = vmatprep.subr.mxu0 %v4754_v9  ;;  %4036 = vmatprep.subr.mxu1 %v4754_v9  ;;  %v2990_v38 = vsel %vm1447_vm2, %v1442_v30, 0 }
 0x622   : > { %v3089_v45 = vsel %vm3087_vm9, %v3080_v42, 0 }
 0x624   : > { %v2153_v52 = vpop.f32.mrb[38].mxu0  ;;  %v2226_v53 = vpop.f32.mrb[38].mxu1 }
 0x625   : > { %v2240_v56 = vsel %vm2237_vm7, %v2153_v52, %v1934_v32  ;;  %v2241_v57 = vsel %vm2237_vm7, %v2226_v53, %v1935_v33  ;;  %v4005_v58 = vpop.f32.mrb[39].mxu0  ;;  %v4010_v59 = vpop.f32.mrb[39].mxu1  ;;  %v3729_v32 = vld [vmem:[#allocation14 + $0x1] ss:$0 sm:$0xff]  ;;  %v1399_v33 = vpack.c.bf16 %v1395_v25, %v1395_v25 }
 0x626   : > { %4024 = vmatmul.mubr.msk.f32.vlgmr.msra.gmra.mrb[42].mxu0 %vm1447_vm2, %v2240_v56  ;;  %4029 = vmatmul.mubr.msk.f32.vlgmr.msra.gmra.mrb[42].mxu1 %vm1447_vm2, %v2241_v57  ;;  %v1276_v55 = vadd.f32 %v3729_v32, %v5406_v43 }
 0x627   : > { %4033 = vmatprep.mubr.msk.f32.mxu0 %vm4755_vm1, %v4754_v9  ;;  %4038 = vmatprep.mubr.msk.f32.mxu1 %vm4755_vm1, %v4754_v9 }
 0x628   : > { %v3081_v43 = vpack.c.bf16 %v1276_v55, %v1276_v55 }
 0x62a   : > { %v3135_v13 = vsel %vm3087_vm9, %v3081_v43, 0 }
 0x6f1   : > { %v2313_v61 = vpop.f32.mrb[40].mxu0  ;;  %v2386_v62 = vpop.f32.mrb[40].mxu1 }
 0x6f2   : > { %v5492_v0 = vsel %vm2543_vm8, %v2313_v61, %v2238_v46  ;;  %v5495_v1 = vsel %vm2543_vm8, %v2386_v62, %v2239_v47  ;;  %v4015_v2 = vpop.f32.mrb[41].mxu0  ;;  %v4020_v3 = vpop.f32.mrb[41].mxu1  ;;  %v3769_v46 = vld [vmem:[%s5749_s26 + $0x8] sm:$0xff] }
 0x6f3   : > { %4032 = vmatpush3.msra.mxu0 %v5492_v0  ;;  %4037 = vmatpush3.msra.mxu1 %v5495_v1  ;;  %v2834_v49 = vmul.f32 %v2833_v14, %v5492_v0  ;;  %v2835_v52 = vmul.f32 %v2833_v14, %v5495_v1 }
 0x6f4   : > { %4034 = vmatmul.mubr.msk.f32.vlgmr.msra.gmra.mrb[44].mxu0 %vm1447_vm2, %v3764_v63  ;;  %4039 = vmatmul.mubr.msk.f32.vlgmr.msra.gmra.mrb[44].mxu1 %vm1447_vm2, %v3764_v63 }
 0x6f5   : > { %4041 = vmatprep.subr.mxu0 %v4754_v9  ;;  %4046 = vmatprep.subr.mxu1 %v4754_v9 }
 0x6f6   : > { %4043 = vmatprep.mubr.msk.f32.mxu0 %vm4755_vm1, %v4754_v9  ;;  %4048 = vmatprep.mubr.msk.f32.mxu1 %vm4755_vm1, %v4754_v9 }
 0x6f9   : > { %v2459_v8 = vpop.f32.mrb[42].mxu0  ;;  %v2532_v10 = vpop.f32.mrb[42].mxu1 }
 0x6fa   : > { %v5510_v11 = vsel %vm2543_vm8, %v2459_v8, %v2240_v56  ;;  %v5513_v12 = vsel %vm2543_vm8, %v2532_v10, %v2241_v57  ;;  %v4025_v15 = vpop.f32.mrb[43].mxu0  ;;  %v4030_v16 = vpop.f32.mrb[43].mxu1 }
 0x6fb   : > { %4042 = vmatpush3.msra.mxu0 %v5510_v11  ;;  %4047 = vmatpush3.msra.mxu1 %v5513_v12  ;;  %v2837_v2 = vmul.f32 %v2833_v14, %v5513_v12 }
 0x6fc   : > { %4044 = vmatmul.mubr.msk.f32.vlgmr.msra.gmra.mrb[46].mxu0 %vm1447_vm2, %v3764_v63  ;;  %4049 = vmatmul.mubr.msk.f32.vlgmr.msra.gmra.mrb[46].mxu1 %vm1447_vm2, %v3764_v63  ;;  %v2836_v63 = vmul.f32 %v2833_v14, %v5510_v11 }
 0x6fd   : > { %4051 = vmatprep.subr.bf16.mxu0 %v4754_v9  ;;  %4057 = vmatprep.subr.bf16.mxu1 %v4754_v9 }
 0x6fe   : > { %4053 = vmatprep.mubr.msk.bf16.mxu0 %vm4755_vm1, %v4754_v9  ;;  %4059 = vmatprep.mubr.msk.bf16.mxu1 %vm4755_vm1, %v4754_v9 }
 0x702   : > { %4052 = vmatpush3.bf16.xpose.msra.mxu0 %v2852_v21  ;;  %4058 = vmatpush3.bf16.xpose.msra.mxu1 %v2898_v22 }
 0x703   : > { %4063 = vmatprep.subr.bf16.mxu0 %v4754_v9  ;;  %4069 = vmatprep.subr.bf16.mxu1 %v4754_v9 }
 0x709   : > { %4054 = vmatmul.mubr.msk.bf16.vlgmr.msra.gmra.mrb[48].mxu0 %vm1447_vm2, %v1399_v33  ;;  %4060 = vmatmul.mubr.msk.bf16.vlgmr.msra.gmra.mrb[48].mxu1 %vm1447_vm2, %v1400_v36 }
 0x70a   : > { %4064 = vmatpush3.bf16.xpose.msra.mxu0 %v2944_v35  ;;  %4070 = vmatpush3.bf16.xpose.msra.mxu1 %v2990_v38 }
 0x70b   : > { %4065 = vmatprep.mubr.msk.bf16.mxu0 %vm4755_vm1, %v4754_v9  ;;  %4071 = vmatprep.mubr.msk.bf16.mxu1 %vm4755_vm1, %v4754_v9 }
 0x70c   : > { %4075 = vmatprep.subr.bf16.mxu0 %v4754_v9  ;;  %4081 = vmatprep.subr.bf16.mxu1 %v4754_v9 }
 0x711   : > { %4066 = vmatmul.mubr.msk.bf16.vlgmr.msra.gmra.mrb[52].mxu0 %vm1447_vm2, %v1401_v41  ;;  %4072 = vmatmul.mubr.msk.bf16.vlgmr.msra.gmra.mrb[52].mxu1 %vm1447_vm2, %v1402_v44 }
 0x712   : > { %4076 = vmatpush3.bf16.msra.mxu0 %v3089_v45  ;;  %4082 = vmatpush3.bf16.msra.mxu1 %v3135_v13 }
 0x713   : > { %4077 = vmatprep.mubr.msk.bf16.mxu0 %vm4755_vm1, %v4754_v9  ;;  %4087 = vmatprep.subr.bf16.mxu0 %v4754_v9 }
 0x714   : > { %4083 = vmatprep.mubr.msk.bf16.mxu1 %vm4755_vm1, %v4754_v9  ;;  %4093 = vmatprep.subr.bf16.mxu1 %v4754_v9 }
 0x7c7   : > { %v2619_v47 = vpop.f32.mrb[44].mxu0  ;;  %v2689_v48 = vpop.f32.mrb[44].mxu1 }
 0x7c8   : > { %v2840_v53 = vmul.f32 %v3769_v46, %v2619_v47  ;;  %v2841_v56 = vmul.f32 %v3769_v46, %v2689_v48  ;;  %v4035_v57 = vpop.f32.mrb[45].mxu0  ;;  %v4040_v58 = vpop.f32.mrb[45].mxu1 }
 0x7c9   : > { %v3731_v58 = vld [vmem:[#allocation14 + $0x3] ss:$0 sm:$0xff] }
 0x7ca   : > { %v2844_v59 = vadd.f32 %v2840_v53, %v2834_v49  ;;  %v2845_v60 = vadd.f32 %v2841_v56, %v2835_v52  ;;  %v3730_v56 = vld [vmem:[#allocation14 + $0x2] ss:$0 sm:$0xff] }
 0x7cb   : > { %v1319_v57 = vadd.f32 %v3730_v56, %v5408_v50 }
 0x7cf   : > { %v2759_v61 = vpop.f32.mrb[46].mxu0  ;;  %v2829_v62 = vpop.f32.mrb[46].mxu1 }
 0x7d0   : > { %v2842_v3 = vmul.f32 %v3769_v46, %v2759_v61  ;;  %v2843_v4 = vmul.f32 %v3769_v46, %v2829_v62  ;;  %v4045_v5 = vpop.f32.mrb[47].mxu0  ;;  %v4050_v6 = vpop.f32.mrb[47].mxu1  ;;  %v3082_v61 = vpack.c.bf16 %v1319_v57, %v1319_v57  ;;  %v1362_v62 = vadd.f32 %v3731_v58, %v5410_v51 }
 0x7d2   : > { %v2847_v7 = vadd.f32 %v2843_v4, %v2837_v2  ;;  %v2846_v0 = vadd.f32 %v2842_v3, %v2836_v63  ;;  %v3181_v5 = vsel %vm3087_vm9, %v3082_v61, 0  ;;  %v3083_v6 = vpack.c.bf16 %v1362_v62, %v1362_v62  ;;  %v3782_v61 = vld [vmem:[#allocation20] ss:$0 sm:$0xff] }
 0x7d4   : > { %v3227_v51 = vsel %vm3087_vm9, %v3083_v6, 0 }
 0x7dc   : > { %v2888_v8 = vpop.f32.mrb[48].mxu0  ;;  %v2934_v1 = vpop.f32.mrb[48].mxu1 }
 0x7dd   : > { %v2889_v10 = vadd.f32 %v2888_v8, %v2844_v59  ;;  %v2935_v15 = vadd.f32 %v2934_v1, %v2845_v60  ;;  %v4055_v16 = vpop.f32.mrb[49].mxu0  ;;  %v4061_v26 = vpop.f32.mrb[49].mxu1  ;;  %v3273_v8 = vld [vmem:[#allocation19] sm:$0xf] }
 0x7de   : > { %v2891_v27 = vpop.f32.mrb[50].mxu0  ;;  %v2937_v17 = vpop.f32.mrb[50].mxu1 }
 0x7df   : > { %v4056_v18 = vpop.f32.mrb[51].mxu0  ;;  %v4062_v19 = vpop.f32.mrb[51].mxu1  ;;  %v3032_v11 = vsel %vm1447_vm2, %v2889_v10, -inf  ;;  %v3035_v12 = vsel %vm1447_vm2, %v2935_v15, -inf  ;;  %v3274_v17 = vld [vmem:[#allocation19 + $0x4] sm:$0xf] }
 0x7e0   : > { %3033 = vmax.xlane.f32.xlu1 %v3032_v11  ;;  %v3327_v18 = vsel %vm3087_vm9, %v3274_v17, 0  ;;  %v3275_v19 = vld [vmem:[#allocation19 + $0x8] sm:$0xf] }
 0x7e4   : > { %v3026_v20 = vpop.f32.mrb[52].mxu1  ;;  %3036 = vmax.xlane.f32.xlu1 %v3035_v12  ;;  %v2980_v21 = vpop.f32.mrb[52].mxu0 }
 0x7e5   : > { %v3027_v22 = vadd.f32 %v3026_v20, %v2847_v7  ;;  %v2981_v23 = vadd.f32 %v2980_v21, %v2846_v0  ;;  %v4067_v24 = vpop.f32.mrb[53].mxu0  ;;  %v4073_v25 = vpop.f32.mrb[53].mxu1  ;;  %v3373_v21 = vsel %vm3087_vm9, %v3275_v19, 0 }
 0x7e6   : > { %v2983_v28 = vpop.f32.mrb[54].mxu0  ;;  %v3029_v29 = vpop.f32.mrb[54].mxu1 }
 0x7e7   : > { %v4068_v30 = vpop.f32.mrb[55].mxu0  ;;  %v4074_v31 = vpop.f32.mrb[55].mxu1  ;;  %v3041_v32 = vsel %vm1447_vm2, %v3027_v22, -inf  ;;  %v3038_v33 = vsel %vm1447_vm2, %v2981_v23, -inf }
 0x7e8   : > { %3042 = vmax.xlane.f32.xlu0 %v3041_v32  ;;  %3039 = vmax.xlane.f32.xlu1 %v3038_v33 }
 0x86d   : > { %v3034_v36 = vpop.xlane.xlu1 %3033 }
 0x86e   : > { %v3044_v37 = vsub.f32 %v2889_v10, %v3034_v36 }
 0x870   : > { %v3048_v34 = vmul.f32 1.442695, %v3044_v37 }
 0x871   : > { %v3037_v35 = vpop.xlane.xlu1 %3036 }
 0x872   : > { %4286 = vpow2.f32 %v3048_v34  ;;  %v3045_v38 = vsub.f32 %v2935_v15, %v3037_v35  ;;  %v3281_v15 = vsel %vm3087_vm9, %v3273_v8, 0 }
 0x874   : > { %v3050_v54 = vmul.f32 1.442695, %v3045_v38 }
 0x875   : > { %v3043_v55 = vpop.xlane.xlu0 %3042  ;;  %v3040_v39 = vpop.xlane.xlu1 %3039 }
 0x876   : > { %4288 = vpow2.f32 %v3050_v54  ;;  %v3047_v40 = vsub.f32 %v3027_v22, %v3043_v55  ;;  %v3046_v42 = vsub.f32 %v2981_v23, %v3040_v39  ;;  %v3276_v23 = vld [vmem:[#allocation19 + $0xc] sm:$0xf] }
 0x877   : > { %v3419_v30 = vsel %vm3087_vm9, %v3276_v23, 0 }
 0x878   : > { %v3052_v43 = vmul.f32 1.442695, %v3046_v42  ;;  %v3054_v41 = vmul.f32 1.442695, %v3047_v40 }
 0x87a   : > { %4290 = vpow2.f32 %v3052_v43 }
 0x87b   : > { %4292 = vpow2.f32 %v3054_v41 }
 0x87c   : > { %v4287_v44 = vpop.eup %4286 }
 0x87d   : > { %v3056_v45 = vsel %vm1447_vm2, %v4287_v44, 0.0 }
 0x87e   : > { %3057 = vadd.xlane.f32.xlu1 %v3056_v45 }
 0x880   : > { %v4289_v13 = vpop.eup %4288 }
 0x881   : > { %v3059_v14 = vsel %vm1447_vm2, %v4289_v13, 0.0 }
 0x882   : > { %3060 = vadd.xlane.f32.xlu1 %v3059_v14 }
 0x884   : > { %v4291_v46 = vpop.eup %4290 }
 0x885   : > { %v3062_v47 = vsel %vm1447_vm2, %v4291_v46, 0.0  ;;  %v4293_v48 = vpop.eup %4292 }
 0x886   : > { %3063 = vadd.xlane.f32.xlu1 %v3062_v47  ;;  %v3065_v49 = vsel %vm1447_vm2, %v4293_v48, 0.0 }
 0x88a   : > { %3066 = vadd.xlane.f32.xlu1 %v3065_v49 }
 0x90b   : > { %v3058_v52 = vpop.xlane.xlu1 %3057 }
 0x90c   : > { %4294 = vrcp.f32 %v3058_v52 }
 0x90f   : > { %v3061_v53 = vpop.xlane.xlu1 %3060 }
 0x910   : > { %4296 = vrcp.f32 %v3061_v53 }
 0x913   : > { %v3064_v59 = vpop.xlane.xlu1 %3063 }
 0x914   : > { %4298 = vrcp.f32 %v3064_v59 }
 0x916   : > { %v4295_v60 = vpop.eup %4294 }
 0x917   : > { %v3072_v63 = vmul.f32 %v4295_v60, %v4287_v44  ;;  %v3067_v2 = vpop.xlane.xlu1 %3066 }
 0x918   : > { %4300 = vrcp.f32 %v3067_v2 }
 0x919   : > { %v3076_v3 = vpack.c.bf16 %v3072_v63, %v3072_v63 }
 0x91a   : > { %v4297_v4 = vpop.eup %4296 }
 0x91b   : > { %v3073_v7 = vmul.f32 %v4297_v4, %v4289_v13  ;;  %4078 = vmatmul.mubr.msk.bf16.vlgmr.msra.gmra.mrb[56].mxu0 %vm1447_vm2, %v3076_v3 }
 0x91c   : > { %4088 = vmatpush3.bf16.msra.mxu0 %v3181_v5  ;;  %4089 = vmatprep.mubr.msk.bf16.mxu0 %vm4755_vm1, %v4754_v9 }
 0x91d   : > { %v3077_v50 = vpack.c.bf16 %v3073_v7, %v3073_v7  ;;  %4099 = vmatprep.subr.bf16.mxu0 %v4754_v9 }
 0x91e   : > { %v4299_v0 = vpop.eup %4298 }
 0x91f   : > { %4084 = vmatmul.mubr.msk.bf16.vlgmr.msra.gmra.mrb[56].mxu1 %vm1447_vm2, %v3077_v50  ;;  %v3074_v1 = vmul.f32 %v4299_v0, %v4291_v46 }
 0x920   : > { %4094 = vmatpush3.bf16.msra.mxu1 %v3227_v51  ;;  %4095 = vmatprep.mubr.msk.bf16.mxu1 %vm4755_vm1, %v4754_v9 }
 0x921   : > { %4105 = vmatprep.subr.bf16.mxu1 %v4754_v9  ;;  %v3078_v10 = vpack.c.bf16 %v3074_v1, %v3074_v1 }
 0x922   : > { %v4301_v16 = vpop.eup %4300 }
 0x923   : > { %v3075_v26 = vmul.f32 %v4301_v16, %v4293_v48  ;;  %4090 = vmatmul.mubr.msk.bf16.vlgmr.msra.gmra.mrb[60].mxu0 %vm1447_vm2, %v3078_v10 }
 0x924   : > { %4100 = vmatpush3.bf16.msra.mxu0 %v3281_v15  ;;  %4101 = vmatprep.mubr.msk.bf16.mxu0 %vm4755_vm1, %v4754_v9 }
 0x925   : > { %v3079_v27 = vpack.c.bf16 %v3075_v26, %v3075_v26  ;;  %4111 = vmatprep.subr.bf16.mxu0 %v4754_v9 }
 0x927   : > { %4096 = vmatmul.mubr.msk.bf16.vlgmr.msra.gmra.mrb[60].mxu1 %vm1447_vm2, %v3079_v27 }
 0x928   : > { %4107 = vmatprep.mubr.msk.bf16.mxu1 %vm4755_vm1, %v4754_v9  ;;  %4106 = vmatpush3.bf16.msra.mxu1 %v3327_v18 }
 0x929   : > { %4117 = vmatprep.subr.bf16.mxu1 %v4754_v9 }
 0x9ee   : > { %v3125_v11 = vpop.f32.mrb[56].mxu0 }
 0x9ef   : > { %v3269_v12 = vpack.c.bf16 %v3125_v11, %v3125_v11  ;;  %v4079_v20 = vpop.f32.mrb[57].mxu0 }
 0x9f0   : > { %v3128_v22 = vpop.f32.mrb[58].mxu0 }
 0x9f1   : > { %v4080_v24 = vpop.f32.mrb[59].mxu0  ;;  %4102 = vmatmul.mubr.msk.bf16.vlgmr.msra.gmra.mrb[64].mxu0 %vm1447_vm2, %v3269_v12 }
 0x9f2   : > { %v3171_v25 = vpop.f32.mrb[56].mxu1  ;;  %4112 = vmatpush3.bf16.msra.mxu0 %v3373_v21  ;;  %4113 = vmatprep.mubr.msk.bf16.mxu0 %vm4755_vm1, %v4754_v9 }
 0x9f3   : > { %v3270_v28 = vpack.c.bf16 %v3171_v25, %v3171_v25  ;;  %v4085_v29 = vpop.f32.mrb[57].mxu1 }
 0x9f4   : > { %v3174_v31 = vpop.f32.mrb[58].mxu1 }
 0x9f5   : > { %v4086_v32 = vpop.f32.mrb[59].mxu1  ;;  %4108 = vmatmul.mubr.msk.bf16.vlgmr.msra.gmra.mrb[64].mxu1 %vm1447_vm2, %v3270_v28 }
 0x9f6   : > { %4118 = vmatpush3.bf16.msra.mxu1 %v3419_v30  ;;  %4119 = vmatprep.mubr.msk.bf16.mxu1 %vm4755_vm1, %v4754_v9  ;;  %v3217_v33 = vpop.f32.mrb[60].mxu0 }
 0x9f7   : > { %v3271_v36 = vpack.c.bf16 %v3217_v33, %v3217_v33  ;;  %v4091_v37 = vpop.f32.mrb[61].mxu0 }
 0x9f8   : > { %v3220_v34 = vpop.f32.mrb[62].mxu0 }
 0x9f9   : > { %v4092_v35 = vpop.f32.mrb[63].mxu0  ;;  %4114 = vmatmul.mubr.msk.bf16.vlgmr.msra.gmra.mrb[68].mxu0 %vm1447_vm2, %v3271_v36 }
 0x9fa   : > { %v3263_v38 = vpop.f32.mrb[60].mxu1 }
 0x9fb   : > { %v3272_v54 = vpack.c.bf16 %v3263_v38, %v3263_v38  ;;  %v4097_v55 = vpop.f32.mrb[61].mxu1 }
 0x9fc   : > { %v3266_v39 = vpop.f32.mrb[62].mxu1 }
 0x9fd   : > { %v4098_v40 = vpop.f32.mrb[63].mxu1  ;;  %4120 = vmatmul.mubr.msk.bf16.vlgmr.msra.gmra.mrb[68].mxu1 %vm1447_vm2, %v3272_v54 }
 0xac4   : > { %v3317_v42 = vpop.f32.mrb[64].mxu0 }
 0xac5   : > { %v4103_v43 = vpop.f32.mrb[65].mxu0  ;;  %v3461_v9 = vsel %vm716_vm0, %v3317_v42, 0.0 }
 0xac6   : > { %v3320_v41 = vpop.f32.mrb[66].mxu0 }
 0xac7   : > { %v4104_v44 = vpop.f32.mrb[67].mxu0 }
 0xac8   : > { %v3363_v45 = vpop.f32.mrb[64].mxu1 }
 0xac9   : > { %v3462_v13 = vsel %vm716_vm0, %v3363_v45, 0.0  ;;  %v4109_v14 = vpop.f32.mrb[65].mxu1 }
 0xaca   : > { %v3463_v46 = vadd.f32 %v3462_v13, %v3461_v9  ;;  %v3366_v47 = vpop.f32.mrb[66].mxu1 }
 0xacb   : > { %v4110_v48 = vpop.f32.mrb[67].mxu1 }
 0xacc   : > { %v3409_v49 = vpop.f32.mrb[68].mxu0 }
 0xacd   : > { %v3464_v52 = vsel %vm716_vm0, %v3409_v49, 0.0  ;;  %v4115_v53 = vpop.f32.mrb[69].mxu0 }
 0xace   : > { %v3465_v56 = vadd.f32 %v3464_v52, %v3463_v46  ;;  %v3412_v57 = vpop.f32.mrb[70].mxu0 }
 0xacf   : > { %v4116_v58 = vpop.f32.mrb[71].mxu0 }
 0xad0   : > { %v3455_v59 = vpop.f32.mrb[68].mxu1 }
 0xad1   : > { %v3466_v60 = vsel %vm716_vm0, %v3455_v59, 0.0  ;;  %v4121_v62 = vpop.f32.mrb[69].mxu1 }
 0xad2   : > { %v3467_v63 = vadd.f32 %v3466_v60, %v3465_v56  ;;  %v3458_v2 = vpop.f32.mrb[70].mxu1 }
 0xad3   : > { %v4122_v3 = vpop.f32.mrb[71].mxu1 }
 0xad4   : > { %v3475_v4 = vadd.f32 %v3782_v61, %v3467_v63 }
 0xad6   : > { %3476 = vst.msk [vmem:[%s712_s15] sm:$0xff] %vm716_vm0, %v3475_v4 }
 0xad7   : > { %4655 = shalt.err (!%p4652_p13)
}
 0xad8   : > { %s4656_s7 = scalar_lea.hbm %s5616_s9, 128  ;;  %s4660_s15 = scalar_lea.hbm %s5750_s8, 256 }
 0xad9   : > { %p4657_p0 = scmp.ne.s32.totalorder %s5616_s9, %s4656_s7  ;;  %p4661_p10 = scmp.lt.u32.totalorder %s5616_s9, %s5750_s8 }
 0xada   : > { %p4662_p5 = scmp.lt.u32.totalorder %s4660_s15, %s4656_s7  ;;  %p4664_p3 = scmp.lt.u32.totalorder %s4656_s7, %s5616_s9 }
 0xadb   : > { %p4658_p2 = pnand %p4657_p0, %p5751_p6 }
 0xadc   : > { %p4663_p7 = por %p4662_p5, %p4661_p10 }
 0xadd   : > { %p4659_p4 = pneg %p4658_p2 }
 0xade   : > { %p4665_p11 = por %p4664_p3, %p4663_p7 }
 0xae0   : > { %p4666_p8 = pnand %p4665_p11, %p4659_p4 }
 0xae2   : > { %4669 = shalt.err (!%p4666_p8)
}
 0xae3   : > { %4167 = dma.vmem_to_hbm [thread:$0]  (%p5751_p6), %s5618_s5, 128, %s5616_s9, %s3478_s19  }
 0xae4 PF: > { %s3503_s27 = sand.u32 1, %s4724_s21   ;;  %p5752_p9 = scmp.ne.s32.totalorder %s5727_s28, 0 }
 0xae5   : > { %p5753_p12 = scmp.ge.s32.totalorder %s4736_s24, 2  ;;  %s3504_s14 = scalar_lea.sflag [#allocation4], %s3503_s27 }
 0xae7   : > { %p4208_p1 = pnand %p5753_p12, %p5752_p9 }
 0xae9   : > { %4719 = dma.done.wait (!%p4208_p1), %s3504_s14, 128  }
 0xaea   : > { %4721 = vsyncadd (!%p4208_p1), %s3504_s14, 4294967168  ;;  %p37_p13 = scmp.ge.s32.totalorder %s5113_s0, 4   ;;  %s5754_s21 = smov %s4728_s22 }
 0xaeb   : > { %s5755_s22 = smov %s4732_s23  ;;  %s5756_s23 = smov %s5124_s3 }
 0xaec   : > { %s5757_s24 = smov %s5113_s0  ;;  %39 = sbr.rel (!%p37_p13) target bundleno = 27 (0x1b), region = 188 }
 0xaf3   :  { %3509 = vsyncpa [#allocation3], 1 }
 0xaf4   :  { %3511 = vsyncpa [#allocation3 + $0x1], 1 }
 0xaf5   :  { %3512 = vsyncpa [#allocation6], 1 }
 0xaf6   :  { %3514 = vsyncpa [#allocation6 + $0x1], 1 }
 0xaf7   :  { %3515 = vsyncpa [#allocation9], 1 }
 0xaf8   :  { %3516 = vsyncpa [#allocation12], 1 }
 0xaf9   :  { %3517 = vsyncpa [#allocation15], 1 }
 0xafa   :  { %3518 = vsyncpa [#allocation18], 1 }
 0xafb   :  { %3519 = vsyncpa [#allocation21], 1 }
 0xafc   :  { %3520 = vsyncpa [#allocation4], 1 }
 0xafd   :  { %3522 = vsyncpa [#allocation4 + $0x1], 1 }

</bundles_post_ra>
